<compile_context>
chip_gen: v7x
topology: tpu7x:2x2x1
jax: 0.10.0
libtpu: 0.0.40
codegen_flags: <defaults>
</compile_context>

<pallas_src>
import jax
import jax.numpy as jnp
from jax.experimental import pallas as pl
from jax.experimental.pallas import tpu as pltpu


# ----------------------------------------------------------------------------
# Kernel 0: xW projections for both branches and both graphs (row-tiled).
# Output layout: xw[0] = [feat@Wsp | feat_a@Wsp], xw[1] = [feat@Wft | feat_a@Wft]
# (branch scalar weights are folded into Wsp / Wft by the wrapper).
# ----------------------------------------------------------------------------
def _xw_kernel(x0_ref, x1_ref, wsp_ref, wft_ref, xw_ref):
    # TODO(synk): training-mode dropout (p=0.1) on the inputs is not implemented.
    x0 = x0_ref[...]
    x1 = x1_ref[...]
    wsp = wsp_ref[...]
    wft = wft_ref[...]
    sp0 = jnp.dot(x0, wsp, preferred_element_type=jnp.float32)
    sp1 = jnp.dot(x1, wsp, preferred_element_type=jnp.float32)
    ft0 = jnp.dot(x0, wft, preferred_element_type=jnp.float32)
    ft1 = jnp.dot(x1, wft, preferred_element_type=jnp.float32)
    xw_ref[0] = jnp.concatenate([sp0, sp1], axis=1).astype(xw_ref.dtype)
    xw_ref[1] = jnp.concatenate([ft0, ft1], axis=1).astype(xw_ref.dtype)


# ----------------------------------------------------------------------------
# Kernel 1: fused branch pipeline for a row block of adj / adj_feat.
#   zs = adj @ xw_sp, zf = adj_feat @ xw_ft   (both branches stacked on lanes)
#   4-head attention combine + fc linear -> emb_cat = [emb | emb_a]
# All attention / fc algebra is packed into block-diagonal constant matrices
# so both branches are handled with no lane slicing.
# ----------------------------------------------------------------------------
def _branch_kernel(adj_ref, adjf_ref, xw_ref,
                   att2_ref, u2_ref, fc2_ref, exp2_ref, fold2_ref, fcb2_ref,
                   emb_ref):
    zs = jnp.dot(adj_ref[...], xw_ref[0], preferred_element_type=jnp.float32)
    zf = jnp.dot(adjf_ref[...], xw_ref[1], preferred_element_type=jnp.float32)

    # per-head attention scores, both branches at once (block-diag w_omega)
    vs = jnp.tanh(jnp.dot(zs, att2_ref[...], preferred_element_type=jnp.float32))
    vf = jnp.tanh(jnp.dot(zf, att2_ref[...], preferred_element_type=jnp.float32))
    vus = jnp.dot(vs, u2_ref[...], preferred_element_type=jnp.float32) + 1e-6
    vuf = jnp.dot(vf, u2_ref[...], preferred_element_type=jnp.float32) + 1e-6

    # 2-way softmax per head (spatial vs feature), numerically stabilized
    m = jnp.maximum(vus, vuf)
    es = jnp.exp(vus - m)
    ef = jnp.exp(vuf - m)
    inv = pl.reciprocal(es + ef, approx=True)
    a_s = es * inv                                  # [tm, 2H]
    a_f = ef * inv

    # fc(concat(heads)) folded: per-head projections + 0/1 expand/fold matmuls
    ps = jnp.dot(zs, fc2_ref[...], preferred_element_type=jnp.float32)   # [tm, 2HF]
    pf = jnp.dot(zf, fc2_ref[...], preferred_element_type=jnp.float32)
    ws = jnp.dot(a_s, exp2_ref[...], preferred_element_type=jnp.float32)
    wf = jnp.dot(a_f, exp2_ref[...], preferred_element_type=jnp.float32)
    emb = jnp.dot(ps * ws + pf * wf, fold2_ref[...],
                  preferred_element_type=jnp.float32) + fcb2_ref[...]
    emb_ref[...] = emb


# ----------------------------------------------------------------------------
# Kernel 2: fused tail (row-tiled over graph_neigh rows).
#   h = emb @ W_back,  g/g_a = sigmoid(AvgReadout),  all 4 bilinear scores.
# ----------------------------------------------------------------------------
def _tail_kernel(mask_ref, embf_ref, embt_ref, wback2_ref, dw2_ref,
                 nb_ref, swap_ref, sela_ref, selb_ref, db_ref,
                 h_ref, logits_ref):
    mask = mask_ref[...]                              # [tm, Np]  bf16
    emb_full = embf_ref[...]                          # [Np, 2F]  bf16
    emb_t = embt_ref[...]                             # [tm, 2F]  bf16

    # h = emb @ W_back   (W_back's emb_a half is zeroed -> one clean matmul)
    h_ref[...] = jnp.dot(emb_t, wback2_ref[...], preferred_element_type=jnp.float32)

    # AvgReadout (masked mean + per-branch L2 normalize) + sigmoid.
    ones = jnp.ones((mask.shape[1], 1), mask.dtype)
    rs = jnp.dot(mask, ones, preferred_element_type=jnp.float32)        # [tm, 1]
    inv_rs = pl.reciprocal(jnp.maximum(rs, 1e-12), approx=True)
    ge = jnp.dot(mask, emb_full, preferred_element_type=jnp.float32) * inv_rs
    # per-branch ||.||^2, broadcast back to each branch's 32-lane block
    nrm2 = jnp.dot(ge * ge, nb_ref[...], preferred_element_type=jnp.float32)
    g2 = jax.nn.sigmoid(ge * jax.lax.rsqrt(jnp.maximum(nrm2, 1e-24)))    # [g | g_a]

    # Bilinear discriminator: emb@W / emb_a@W once, four scores via two
    # segmented-sum matmuls, single [tm, 4] store.
    ew2 = jnp.dot(emb_t, dw2_ref[...], preferred_element_type=jnp.float32)   # [embW | emb_aW]
    g2_swap = jnp.dot(g2, swap_ref[...], preferred_element_type=jnp.float32)  # [g_a | g]
    same = ew2 * g2
    cross = ew2 * g2_swap
    logits = (jnp.dot(same, sela_ref[...], preferred_element_type=jnp.float32)
              + jnp.dot(cross, selb_ref[...], preferred_element_type=jnp.float32)
              + db_ref[...])
    logits_ref[...] = logits


# ----------------------------------------------------------------------------
# Wrapper helpers
# ----------------------------------------------------------------------------
def _round_up(x, m):
    return ((x + m - 1) // m) * m


def _full(shape):
    nd = len(shape)
    return pl.BlockSpec(shape, lambda i, _nd=nd: (0,) * _nd)


def _pad2(a, rows, cols):
    return jnp.pad(a, ((0, rows - a.shape[0]), (0, cols - a.shape[1])))


def _bdiag2(m):
    z = jnp.zeros_like(m)
    return jnp.concatenate(
        [jnp.concatenate([m, z], axis=1), jnp.concatenate([z, m], axis=1)], axis=0)


# ----------------------------------------------------------------------------
# Encoder forward
# ----------------------------------------------------------------------------
def encoder_forward(params, feat, feat_a, adj, adj_feat, graph_neigh):
    n, in_feat = feat.shape
    w_omega = params["w_omega"]                   # [H, F, hd]
    u_omega = params["u_omega"]                   # [H, hd, 1]
    fc_w_t = params["fc_w_t"]                     # [H*F, F]
    heads, f, hd = w_omega.shape
    bf16 = jnp.bfloat16

    # ---- padding / tile choice ---------------------------------------------
    in_pad = _round_up(in_feat, 128)              # lane-dense h output
    n8 = _round_up(n, 8)
    # Budget the double-buffered row-tiled streams of the heaviest kernel to
    # ~16 MiB -> comfortable inside a 32 MiB scoped-VMEM limit on v5e/v6e/v7x.
    row_bytes = 8 * in_pad + 8 * n8
    tm = (16 * 1024 * 1024) // row_bytes
    tm = int(max(8, min(512, (tm // 8) * 8)))
    tm = min(tm, n8)
    n_pad = _round_up(n8, tm)
    n_tiles = n_pad // tm

    cparams = pltpu.CompilerParams(
        dimension_semantics=("parallel",),
        vmem_limit_bytes=32 * 1024 * 1024)

    # ---- padded / bf16 streamed inputs --------------------------------------
    feat_p = _pad2(feat, n_pad, in_pad).astype(bf16)
    feat_a_p = _pad2(feat_a, n_pad, in_pad).astype(bf16)
    adj_p = _pad2(adj, n_pad, n_pad).astype(bf16)
    adjf_p = _pad2(adj_feat, n_pad, n_pad).astype(bf16)
    mask_p = _pad2(graph_neigh, n_pad, n_pad).astype(bf16)

    # branch scalar weights folded into the projection weights (commutes)
    w_sp = _pad2(params["w_spatial"] * params["spatial_weight"], in_pad, f).astype(bf16)
    w_ft = _pad2(params["w_feat"] * params["feature_weight"], in_pad, f).astype(bf16)

    # ---- attention / fc packing matrices (tiny, XLA-folded under jit) -------
    #  w_att[:, h*hd+d]       = w_omega[h, :, d]
    #  u_bd[h*hd+d, h']       = u_omega[h, d] * (h==h')
    #  fc_wcat[:, h*F:(h+1)F] = fc_w_t[h*F:(h+1)F, :]
    w_att = jnp.transpose(w_omega, (1, 0, 2)).reshape(f, heads * hd)
    u_bd = (u_omega[:, :, 0][:, :, None] *
            jnp.eye(heads, dtype=jnp.float32)[:, None, :]).reshape(heads * hd, heads)
    fc_wcat = fc_w_t.reshape(heads, f, f).transpose(1, 0, 2).reshape(f, heads * f)
    expand = jnp.kron(jnp.eye(heads, dtype=jnp.float32), jnp.ones((1, f), jnp.float32))
    fold = jnp.kron(jnp.ones((heads, 1), jnp.float32), jnp.eye(f, dtype=jnp.float32))

    att2 = _bdiag2(w_att)                       # [2F, 2*H*hd]
    u2 = _bdiag2(u_bd)                          # [2*H*hd, 2H]
    fc2 = _bdiag2(fc_wcat)                      # [2F, 2*H*F]
    exp2 = _bdiag2(expand)                      # [2H, 2*H*F]
    fold2 = _bdiag2(fold)                       # [2*H*F, 2F]
    fcb2 = jnp.concatenate([params["fc_b"], params["fc_b"]], axis=1)   # [1, 2F]

    # ---- tail packing matrices ----------------------------------------------
    w_back_p = _pad2(params["w_back"], f, in_pad)
    w_back2 = jnp.concatenate([w_back_p, jnp.zeros_like(w_back_p)], axis=0).astype(bf16)
    dw2 = _bdiag2(params["disc_w"]).astype(bf16)                       # [2F, 2F]
    eye_f = jnp.eye(f, dtype=jnp.float32)
    zero_ff = jnp.zeros((f, f), jnp.float32)
    swap2 = jnp.concatenate(
        [jnp.concatenate([zero_ff, eye_f], axis=1),
         jnp.concatenate([eye_f, zero_ff], axis=1)], axis=0)           # [2F, 2F]
    norm_bcast = jnp.kron(jnp.eye(2, dtype=jnp.float32),
                          jnp.ones((f, f), jnp.float32))               # [2F, 2F]
    one_c = jnp.ones((f, 1), jnp.float32)
    zero_c = jnp.zeros((f, 1), jnp.float32)
    # same = [embW*g | emb_aW*g_a] -> (sc1, -, sc1a, -)
    sel_same = jnp.concatenate(
        [jnp.concatenate([one_c, zero_c, zero_c, zero_c], axis=1),
         jnp.concatenate([zero_c, zero_c, one_c, zero_c], axis=1)], axis=0)
    # cross = [embW*g_a | emb_aW*g] -> (-, sc2, -, sc2a)
    sel_cross = jnp.concatenate(
        [jnp.concatenate([zero_c, zero_c, zero_c, one_c], axis=1),
         jnp.concatenate([zero_c, one_c, zero_c, zero_c], axis=1)], axis=0)
    db = jnp.reshape(params["disc_b"], (1, 1))

    # ---- kernel 0: xW projections --------------------------------------------
    cost_xw = pl.CostEstimate(
        flops=8 * n_pad * in_pad * f,
        transcendentals=0,
        bytes_accessed=4 * n_pad * in_pad + 4 * in_pad * f + 8 * n_pad * f)
    xw = pl.pallas_call(
        _xw_kernel,
        out_shape=jax.ShapeDtypeStruct((2, n_pad, 2 * f), bf16),
        grid=(n_tiles,),
        in_specs=[
            pl.BlockSpec((tm, in_pad), lambda i: (i, 0)),      # feat rows
            pl.BlockSpec((tm, in_pad), lambda i: (i, 0)),      # feat_a rows
            _full((in_pad, f)),                                # W_spatial (scaled)
            _full((in_pad, f)),                                # W_feat (scaled)
        ],
        out_specs=pl.BlockSpec((2, tm, 2 * f), lambda i: (0, i, 0)),
        compiler_params=cparams,
        cost_estimate=cost_xw,
    )(feat_p, feat_a_p, w_sp, w_ft)

    # ---- kernel 1: branch pipeline (adj / adj_feat streamed once) ------------
    cost_br = pl.CostEstimate(
        flops=8 * n_pad * n_pad * f,
        transcendentals=n_pad * (4 * f + 8 * heads),
        bytes_accessed=4 * n_pad * n_pad + 8 * n_pad * f + 8 * n_pad * f)
    emb_cat = pl.pallas_call(
        _branch_kernel,
        out_shape=jax.ShapeDtypeStruct((n_pad, 2 * f), jnp.float32),
        grid=(n_tiles,),
        in_specs=[
            pl.BlockSpec((tm, n_pad), lambda i: (i, 0)),       # adj rows
            pl.BlockSpec((tm, n_pad), lambda i: (i, 0)),       # adj_feat rows
            _full((2, n_pad, 2 * f)),                          # xW (resident RHS)
            _full((2 * f, 2 * heads * hd)),                    # att2
            _full((2 * heads * hd, 2 * heads)),                # u2
            _full((2 * f, 2 * heads * f)),                     # fc2
            _full((2 * heads, 2 * heads * f)),                 # exp2
            _full((2 * heads * f, 2 * f)),                     # fold2
            _full((1, 2 * f)),                                 # fc bias (x2)
        ],
        out_specs=pl.BlockSpec((tm, 2 * f), lambda i: (i, 0)),
        compiler_params=cparams,
        cost_estimate=cost_br,
    )(adj_p, adjf_p, xw, att2, u2, fc2, exp2, fold2, fcb2)

    # ---- kernel 2: tail (readouts + discriminator + back-projection) ---------
    emb_bf = emb_cat.astype(bf16)
    cost_tail = pl.CostEstimate(
        flops=4 * n_pad * n_pad * f + 4 * n_pad * f * in_pad,
        transcendentals=n_pad * 2 * f,
        bytes_accessed=2 * n_pad * n_pad + 4 * n_pad * in_pad + 8 * n_pad * f)
    h_pad, logits = pl.pallas_call(
        _tail_kernel,
        out_shape=(jax.ShapeDtypeStruct((n_pad, in_pad), jnp.float32),
                   jax.ShapeDtypeStruct((n_pad, 4), jnp.float32)),
        grid=(n_tiles,),
        in_specs=[
            pl.BlockSpec((tm, n_pad), lambda i: (i, 0)),       # graph_neigh rows
            _full((n_pad, 2 * f)),                             # emb|emb_a (full RHS)
            pl.BlockSpec((tm, 2 * f), lambda i: (i, 0)),       # emb|emb_a (row tile)
            _full((2 * f, in_pad)),                            # W_back (emb_a half zeroed)
            _full((2 * f, 2 * f)),                             # disc W (block-diag)
            _full((2 * f, 2 * f)),                             # per-branch norm broadcast
            _full((2 * f, 2 * f)),                             # branch swap permutation
            _full((2 * f, 4)),                                 # same-pair selection
            _full((2 * f, 4)),                                 # cross-pair selection
            _full((1, 1)),                                     # disc bias
        ],
        out_specs=(pl.BlockSpec((tm, in_pad), lambda i: (i, 0)),
                   pl.BlockSpec((tm, 4), lambda i: (i, 0))),
        compiler_params=cparams,
        cost_estimate=cost_tail,
    )(mask_p, emb_bf, emb_bf, w_back2, dw2, norm_bcast, swap2,
      sel_same, sel_cross, db)

    emb = emb_cat[:n, :f]
    h = h_pad[:n, :in_feat]
    ret = logits[:n, 0:2]
    ret_a = logits[:n, 2:4]
    return emb, h, ret, ret_a


# ----------------------------------------------------------------------------
# pure-JAX reference (mirrors the PyTorch module, eval mode)
# ----------------------------------------------------------------------------
def encoder_forward_ref(params, feat, feat_a, adj, adj_feat, graph_neigh):
    hp = jax.lax.Precision.HIGHEST
    mm = lambda a, b: jnp.dot(a, b, precision=hp)

    def branch(x):
        zs = mm(adj, mm(x, params["w_spatial"])) * params["spatial_weight"]
        zf = mm(adj_feat, mm(x, params["w_feat"])) * params["feature_weight"]
        heads = []
        for hh in range(params["w_omega"].shape[0]):
            vus = mm(jnp.tanh(mm(zs, params["w_omega"][hh])), params["u_omega"][hh]) + 1e-6
            vuf = mm(jnp.tanh(mm(zf, params["w_omega"][hh])), params["u_omega"][hh]) + 1e-6
            al = jax.nn.softmax(jnp.concatenate([vus, vuf], axis=1), axis=1)
            heads.append(al[:, 0:1] * zs + al[:, 1:2] * zf)
        return mm(jnp.concatenate(heads, axis=1), params["fc_w_t"]) + params["fc_b"]

    emb, emb_a = branch(feat), branch(feat_a)
    h = mm(emb, params["w_back"])

    def read(e):
        ge = mm(graph_neigh, e) / jnp.sum(graph_neigh, axis=1, keepdims=True)
        nrm = jnp.maximum(jnp.sqrt(jnp.sum(ge * ge, axis=1, keepdims=True)), 1e-12)
        return jax.nn.sigmoid(ge / nrm)

    g, g_a = read(emb), read(emb_a)
    W, b = params["disc_w"], params["disc_b"]

    def disc(c, hpl, hmi):
        s1 = jnp.sum(mm(hpl, W) * c, axis=1, keepdims=True) + b
        s2 = jnp.sum(mm(hmi, W) * c, axis=1, keepdims=True) + b
        return jnp.concatenate([s1, s2], axis=1)

    return emb, h, disc(g, emb, emb_a), disc(g_a, emb_a, emb)


# ----------------------------------------------------------------------------
# deterministic parameter init (xavier-uniform shapes per the PyTorch module)
# ----------------------------------------------------------------------------
def xavier_uniform(key, shape, fan_in, fan_out):
    a = (6.0 / (fan_in + fan_out)) ** 0.5
    return jax.random.uniform(key, shape, jnp.float32, -a, a)


def init_params(key, in_features, out_features, num_heads):
    head_dim = out_features // num_heads
    ks = jax.random.split(key, 8)
    w_omega = jnp.stack([
        xavier_uniform(k, (out_features, head_dim), out_features, head_dim)
        for k in jax.random.split(ks[3], num_heads)])
    u_omega = jnp.stack([
        xavier_uniform(k, (head_dim, 1), head_dim, 1)
        for k in jax.random.split(ks[4], num_heads)])
    return {
        "w_spatial": xavier_uniform(ks[0], (in_features, out_features), in_features, out_features),
        "w_feat":    xavier_uniform(ks[1], (in_features, out_features), in_features, out_features),
        "w_back":    xavier_uniform(ks[2], (out_features, in_features), out_features, in_features),
        "spatial_weight": jnp.array(1.0, jnp.float32),
        "feature_weight": jnp.array(1.0, jnp.float32),
        "w_omega": w_omega,                       # [heads, out_features, head_dim]
        "u_omega": u_omega,                       # [heads, head_dim, 1]
        # nn.Linear(out*heads, out): store transposed weight for x @ W^T
        "fc_w_t": xavier_uniform(ks[5], (out_features * num_heads, out_features),
                                 out_features * num_heads, out_features),
        "fc_b": jnp.zeros((1, out_features), jnp.float32),
        # nn.Bilinear(out, out, 1): weight [out, out], bias 0
        "disc_w": xavier_uniform(ks[6], (out_features, out_features), out_features, out_features),
        "disc_b": jnp.zeros((1, 1), jnp.float32),
    }


if __name__ == "__main__":
    # small, deliberately non-aligned sizes to exercise the padding paths
    N, IN_FEAT, OUT_FEAT, HEADS = 12, 20, 32, 4

    key = jax.random.PRNGKey(0)
    k_feat, k_feat_a, k_adj, k_adj_f, k_neigh, k_params = jax.random.split(key, 6)

    feat = jax.random.normal(k_feat, (N, IN_FEAT), jnp.float32)
    feat_a = jax.random.normal(k_feat_a, (N, IN_FEAT), jnp.float32)
    adj = jax.random.uniform(k_adj, (N, N), jnp.float32)
    adj_feat = jax.random.uniform(k_adj_f, (N, N), jnp.float32)
    # binary neighbourhood mask with self-loops (row sums > 0 for AvgReadout)
    graph_neigh = jnp.maximum(
        jnp.eye(N, dtype=jnp.float32),
        (jax.random.uniform(k_neigh, (N, N)) > 0.5).astype(jnp.float32))

    params = init_params(k_params, IN_FEAT, OUT_FEAT, HEADS)

    fwd = jax.jit(encoder_forward)
    outs = fwd(params, feat, feat_a, adj, adj_feat, graph_neigh)
    jax.block_until_ready(outs)
    hiden_emb, h, ret, ret_a = outs

    assert hiden_emb.shape == (N, OUT_FEAT)
    assert h.shape == (N, IN_FEAT)
    assert ret.shape == (N, 2)
    assert ret_a.shape == (N, 2)

    # sanity check against a pure-JAX (f32, HIGHEST-precision) reference.
    # tolerance is 3e-2 because the [N,N] streams / activations are deliberately
    # cast to bfloat16 in the kernels (perf feedback), with f32 accumulation.
    refs = encoder_forward_ref(params, feat, feat_a, adj, adj_feat, graph_neigh)
    for got, want in zip(outs, refs):
        err = float(jnp.max(jnp.abs(got - want)) / (jnp.max(jnp.abs(want)) + 1e-6))
        assert err < 3e-2, f"mismatch: rel-err {err}"

    print("KERNEL_OK")
</pallas_src>

<mosaic_0001>
module attributes {stable_mosaic.version = 11 : i64} {
  func.func @_xw_kernel(%arg0: i32, %arg1: memref<16x128xbf16, #tpu.memory_space<vmem>>, %arg2: memref<16x128xbf16, #tpu.memory_space<vmem>>, %arg3: memref<128x32xbf16, #tpu.memory_space<vmem>>, %arg4: memref<128x32xbf16, #tpu.memory_space<vmem>>, %arg5: memref<2x16x64xbf16, #tpu.memory_space<vmem>>) attributes {dimension_semantics = [#tpu.dimension_semantics<parallel>], iteration_bounds = array<i64: 1>, scalar_prefetch = 0 : i64, scratch_operands = 0 : i64, tpu.core_type = #tpu.core_type<tc>, window_params = [{transform_indices = @transform_0, window_bounds = array<i64: 16, 128>}, {transform_indices = @transform_1, window_bounds = array<i64: 16, 128>}, {pipeline_mode = #tpu.pipeline_mode<synchronous>, transform_indices = @transform_2, window_bounds = array<i64: 128, 32>}, {pipeline_mode = #tpu.pipeline_mode<synchronous>, transform_indices = @transform_3, window_bounds = array<i64: 128, 32>}, {transform_indices = @transform_4, window_bounds = array<i64: 2, 16, 64>}]} {
    %c0 = arith.constant 0 : index
    %c0_0 = arith.constant 0 : index
    %0 = vector.load %arg1[%c0, %c0_0] : memref<16x128xbf16, #tpu.memory_space<vmem>>, vector<16x128xbf16>
    %c0_1 = arith.constant 0 : index
    %c0_2 = arith.constant 0 : index
    %1 = vector.load %arg2[%c0_1, %c0_2] : memref<16x128xbf16, #tpu.memory_space<vmem>>, vector<16x128xbf16>
    %c0_3 = arith.constant 0 : index
    %c0_4 = arith.constant 0 : index
    %2 = vector.load %arg3[%c0_3, %c0_4] : memref<128x32xbf16, #tpu.memory_space<vmem>>, vector<128x32xbf16>
    %c0_5 = arith.constant 0 : index
    %c0_6 = arith.constant 0 : index
    %3 = vector.load %arg4[%c0_5, %c0_6] : memref<128x32xbf16, #tpu.memory_space<vmem>>, vector<128x32xbf16>
    %cst = arith.constant dense<0.000000e+00> : vector<16x32xf32>
    %4 = tpu.matmul %0, %2, %cst {dimension_numbers = #tpu.dot_dimension_numbers<[1], [0], [0], [1], [0, 0, 1, 1], [], []>} : vector<16x128xbf16>, vector<128x32xbf16>, vector<16x32xf32> -> vector<16x32xf32>
    %cst_7 = arith.constant dense<0.000000e+00> : vector<16x32xf32>
    %5 = tpu.matmul %1, %2, %cst_7 {dimension_numbers = #tpu.dot_dimension_numbers<[1], [0], [0], [1], [0, 0, 1, 1], [], []>} : vector<16x128xbf16>, vector<128x32xbf16>, vector<16x32xf32> -> vector<16x32xf32>
    %cst_8 = arith.constant dense<0.000000e+00> : vector<16x32xf32>
    %6 = tpu.matmul %0, %3, %cst_8 {dimension_numbers = #tpu.dot_dimension_numbers<[1], [0], [0], [1], [0, 0, 1, 1], [], []>} : vector<16x128xbf16>, vector<128x32xbf16>, vector<16x32xf32> -> vector<16x32xf32>
    %cst_9 = arith.constant dense<0.000000e+00> : vector<16x32xf32>
    %7 = tpu.matmul %1, %3, %cst_9 {dimension_numbers = #tpu.dot_dimension_numbers<[1], [0], [0], [1], [0, 0, 1, 1], [], []>} : vector<16x128xbf16>, vector<128x32xbf16>, vector<16x32xf32> -> vector<16x32xf32>
    %8 = tpu.concatenate %4, %5 in 1 : vector<16x32xf32>, vector<16x32xf32> -> vector<16x64xf32>
    %9 = arith.truncf %8 : vector<16x64xf32> to vector<16x64xbf16>
    %c0_10 = arith.constant 0 : index
    %c0_11 = arith.constant 0 : index
    %c0_12 = arith.constant 0 : index
    %10 = vector.load %arg5[%c0_10, %c0_11, %c0_12] : memref<2x16x64xbf16, #tpu.memory_space<vmem>>, vector<1x16x64xbf16>
    %11 = vector.shape_cast %10 : vector<1x16x64xbf16> to vector<16x64xbf16>
    %12 = vector.shape_cast %9 : vector<16x64xbf16> to vector<1x16x64xbf16>
    tpu.vector_store %arg5[%c0_10, %c0_11, %c0_12], %12 {strides = array<i32>} : memref<2x16x64xbf16, #tpu.memory_space<vmem>>, vector<1x16x64xbf16>,
    %13 = tpu.concatenate %6, %7 in 1 : vector<16x32xf32>, vector<16x32xf32> -> vector<16x64xf32>
    %14 = arith.truncf %13 : vector<16x64xf32> to vector<16x64xbf16>
    %c1 = arith.constant 1 : index
    %c0_13 = arith.constant 0 : index
    %c0_14 = arith.constant 0 : index
    %15 = vector.load %arg5[%c1, %c0_13, %c0_14] : memref<2x16x64xbf16, #tpu.memory_space<vmem>>, vector<1x16x64xbf16>
    %16 = vector.shape_cast %15 : vector<1x16x64xbf16> to vector<16x64xbf16>
    %17 = vector.shape_cast %14 : vector<16x64xbf16> to vector<1x16x64xbf16>
    tpu.vector_store %arg5[%c1, %c0_13, %c0_14], %17 {strides = array<i32>} : memref<2x16x64xbf16, #tpu.memory_space<vmem>>, vector<1x16x64xbf16>,
    return
  }
  func.func @transform_0(%arg0: i32) -> (i32, i32) {
    %c0_i32 = arith.constant 0 : i32
    %c0_i32_0 = arith.constant 0 : i32
    return %arg0, %c0_i32 : i32, i32
  }
  func.func @transform_1(%arg0: i32) -> (i32, i32) {
    %c0_i32 = arith.constant 0 : i32
    %c0_i32_0 = arith.constant 0 : i32
    return %arg0, %c0_i32 : i32, i32
  }
  func.func @transform_2(%arg0: i32) -> (i32, i32) {
    %c0_i32 = arith.constant 0 : i32
    %c0_i32_0 = arith.constant 0 : i32
    %c0_i32_1 = arith.constant 0 : i32
    return %c0_i32, %c0_i32_0 : i32, i32
  }
  func.func @transform_3(%arg0: i32) -> (i32, i32) {
    %c0_i32 = arith.constant 0 : i32
    %c0_i32_0 = arith.constant 0 : i32
    %c0_i32_1 = arith.constant 0 : i32
    return %c0_i32, %c0_i32_0 : i32, i32
  }
  func.func @transform_4(%arg0: i32) -> (i32, i32, i32) {
    %c0_i32 = arith.constant 0 : i32
    %c0_i32_0 = arith.constant 0 : i32
    %c0_i32_1 = arith.constant 0 : i32
    return %c0_i32, %arg0, %c0_i32_0 : i32, i32, i32
  }
}

module attributes {stable_mosaic.version = 11 : i64} {
  func.func @_branch_kernel(%arg0: i32, %arg1: memref<16x16xbf16, #tpu.memory_space<vmem>>, %arg2: memref<16x16xbf16, #tpu.memory_space<vmem>>, %arg3: memref<2x16x64xbf16, #tpu.memory_space<vmem>>, %arg4: memref<64x64xf32, #tpu.memory_space<vmem>>, %arg5: memref<64x8xf32, #tpu.memory_space<vmem>>, %arg6: memref<64x256xf32, #tpu.memory_space<vmem>>, %arg7: memref<8x256xf32, #tpu.memory_space<vmem>>, %arg8: memref<256x64xf32, #tpu.memory_space<vmem>>, %arg9: memref<1x64xf32, #tpu.memory_space<vmem>>, %arg10: memref<16x64xf32, #tpu.memory_space<vmem>>) attributes {dimension_semantics = [#tpu.dimension_semantics<parallel>], iteration_bounds = array<i64: 1>, scalar_prefetch = 0 : i64, scratch_operands = 0 : i64, tpu.core_type = #tpu.core_type<tc>, window_params = [{transform_indices = @transform_0, window_bounds = array<i64: 16, 16>}, {transform_indices = @transform_1, window_bounds = array<i64: 16, 16>}, {pipeline_mode = #tpu.pipeline_mode<synchronous>, transform_indices = @transform_2, window_bounds = array<i64: 2, 16, 64>}, {pipeline_mode = #tpu.pipeline_mode<synchronous>, transform_indices = @transform_3, window_bounds = array<i64: 64, 64>}, {pipeline_mode = #tpu.pipeline_mode<synchronous>, transform_indices = @transform_4, window_bounds = array<i64: 64, 8>}, {pipeline_mode = #tpu.pipeline_mode<synchronous>, transform_indices = @transform_5, window_bounds = array<i64: 64, 256>}, {pipeline_mode = #tpu.pipeline_mode<synchronous>, transform_indices = @transform_6, window_bounds = array<i64: 8, 256>}, {pipeline_mode = #tpu.pipeline_mode<synchronous>, transform_indices = @transform_7, window_bounds = array<i64: 256, 64>}, {pipeline_mode = #tpu.pipeline_mode<synchronous>, transform_indices = @transform_8, window_bounds = array<i64: 1, 64>}, {transform_indices = @transform_9, window_bounds = array<i64: 16, 64>}]} {
    %c0 = arith.constant 0 : index
    %c0_0 = arith.constant 0 : index
    %0 = vector.load %arg1[%c0, %c0_0] : memref<16x16xbf16, #tpu.memory_space<vmem>>, vector<16x16xbf16>
    %c0_1 = arith.constant 0 : index
    %c0_2 = arith.constant 0 : index
    %c0_3 = arith.constant 0 : index
    %1 = vector.load %arg3[%c0_1, %c0_2, %c0_3] : memref<2x16x64xbf16, #tpu.memory_space<vmem>>, vector<1x16x64xbf16>
    %2 = vector.shape_cast %1 : vector<1x16x64xbf16> to vector<16x64xbf16>
    %cst = arith.constant dense<0.000000e+00> : vector<16x64xf32>
    %3 = tpu.matmul %0, %2, %cst {dimension_numbers = #tpu.dot_dimension_numbers<[1], [0], [0], [1], [0, 0, 1, 1], [], []>} : vector<16x16xbf16>, vector<16x64xbf16>, vector<16x64xf32> -> vector<16x64xf32>
    %c0_4 = arith.constant 0 : index
    %c0_5 = arith.constant 0 : index
    %4 = vector.load %arg2[%c0_4, %c0_5] : memref<16x16xbf16, #tpu.memory_space<vmem>>, vector<16x16xbf16>
    %c1 = arith.constant 1 : index
    %c0_6 = arith.constant 0 : index
    %c0_7 = arith.constant 0 : index
    %5 = vector.load %arg3[%c1, %c0_6, %c0_7] : memref<2x16x64xbf16, #tpu.memory_space<vmem>>, vector<1x16x64xbf16>
    %6 = vector.shape_cast %5 : vector<1x16x64xbf16> to vector<16x64xbf16>
    %cst_8 = arith.constant dense<0.000000e+00> : vector<16x64xf32>
    %7 = tpu.matmul %4, %6, %cst_8 {dimension_numbers = #tpu.dot_dimension_numbers<[1], [0], [0], [1], [0, 0, 1, 1], [], []>} : vector<16x16xbf16>, vector<16x64xbf16>, vector<16x64xf32> -> vector<16x64xf32>
    %c0_9 = arith.constant 0 : index
    %c0_10 = arith.constant 0 : index
    %8 = vector.load %arg4[%c0_9, %c0_10] : memref<64x64xf32, #tpu.memory_space<vmem>>, vector<64x64xf32>
    %cst_11 = arith.constant dense<0.000000e+00> : vector<16x64xf32>
    %9 = tpu.matmul %3, %8, %cst_11 {dimension_numbers = #tpu.dot_dimension_numbers<[1], [0], [0], [1], [0, 0, 1, 1], [], []>} : vector<16x64xf32>, vector<64x64xf32>, vector<16x64xf32> -> vector<16x64xf32>
    %10 = math.tanh %9 : vector<16x64xf32>
    %c0_12 = arith.constant 0 : index
    %c0_13 = arith.constant 0 : index
    %11 = vector.load %arg4[%c0_12, %c0_13] : memref<64x64xf32, #tpu.memory_space<vmem>>, vector<64x64xf32>
    %cst_14 = arith.constant dense<0.000000e+00> : vector<16x64xf32>
    %12 = tpu.matmul %7, %11, %cst_14 {dimension_numbers = #tpu.dot_dimension_numbers<[1], [0], [0], [1], [0, 0, 1, 1], [], []>} : vector<16x64xf32>, vector<64x64xf32>, vector<16x64xf32> -> vector<16x64xf32>
    %13 = math.tanh %12 : vector<16x64xf32>
    %c0_15 = arith.constant 0 : index
    %c0_16 = arith.constant 0 : index
    %14 = vector.load %arg5[%c0_15, %c0_16] : memref<64x8xf32, #tpu.memory_space<vmem>>, vector<64x8xf32>
    %cst_17 = arith.constant dense<0.000000e+00> : vector<16x8xf32>
    %15 = tpu.matmul %10, %14, %cst_17 {dimension_numbers = #tpu.dot_dimension_numbers<[1], [0], [0], [1], [0, 0, 1, 1], [], []>} : vector<16x64xf32>, vector<64x8xf32>, vector<16x8xf32> -> vector<16x8xf32>
    %cst_18 = arith.constant 9.99999997E-7 : f32
    %16 = vector.broadcast %cst_18 : f32 to vector<16x8xf32>
    %17 = arith.addf %15, %16 : vector<16x8xf32>
    %c0_19 = arith.constant 0 : index
    %c0_20 = arith.constant 0 : index
    %18 = vector.load %arg5[%c0_19, %c0_20] : memref<64x8xf32, #tpu.memory_space<vmem>>, vector<64x8xf32>
    %cst_21 = arith.constant dense<0.000000e+00> : vector<16x8xf32>
    %19 = tpu.matmul %13, %18, %cst_21 {dimension_numbers = #tpu.dot_dimension_numbers<[1], [0], [0], [1], [0, 0, 1, 1], [], []>} : vector<16x64xf32>, vector<64x8xf32>, vector<16x8xf32> -> vector<16x8xf32>
    %cst_22 = arith.constant 9.99999997E-7 : f32
    %20 = vector.broadcast %cst_22 : f32 to vector<16x8xf32>
    %21 = arith.addf %19, %20 : vector<16x8xf32>
    %22 = arith.maximumf %17, %21 : vector<16x8xf32>
    %23 = arith.subf %17, %22 : vector<16x8xf32>
    %24 = math.exp %23 : vector<16x8xf32>
    %25 = arith.subf %21, %22 : vector<16x8xf32>
    %26 = math.exp %25 : vector<16x8xf32>
    %27 = arith.addf %24, %26 : vector<16x8xf32>
    %28 = tpu.reciprocal %27 {approx = true} : vector<16x8xf32> -> vector<16x8xf32>
    %29 = arith.mulf %24, %28 : vector<16x8xf32>
    %30 = arith.mulf %26, %28 : vector<16x8xf32>
    %c0_23 = arith.constant 0 : index
    %c0_24 = arith.constant 0 : index
    %31 = vector.load %arg6[%c0_23, %c0_24] : memref<64x256xf32, #tpu.memory_space<vmem>>, vector<64x256xf32>
    %cst_25 = arith.constant dense<0.000000e+00> : vector<16x256xf32>
    %32 = tpu.matmul %3, %31, %cst_25 {dimension_numbers = #tpu.dot_dimension_numbers<[1], [0], [0], [1], [0, 0, 1, 1], [], []>} : vector<16x64xf32>, vector<64x256xf32>, vector<16x256xf32> -> vector<16x256xf32>
    %c0_26 = arith.constant 0 : index
    %c0_27 = arith.constant 0 : index
    %33 = vector.load %arg6[%c0_26, %c0_27] : memref<64x256xf32, #tpu.memory_space<vmem>>, vector<64x256xf32>
    %cst_28 = arith.constant dense<0.000000e+00> : vector<16x256xf32>
    %34 = tpu.matmul %7, %33, %cst_28 {dimension_numbers = #tpu.dot_dimension_numbers<[1], [0], [0], [1], [0, 0, 1, 1], [], []>} : vector<16x64xf32>, vector<64x256xf32>, vector<16x256xf32> -> vector<16x256xf32>
    %c0_29 = arith.constant 0 : index
    %c0_30 = arith.constant 0 : index
    %35 = vector.load %arg7[%c0_29, %c0_30] : memref<8x256xf32, #tpu.memory_space<vmem>>, vector<8x256xf32>
    %cst_31 = arith.constant dense<0.000000e+00> : vector<16x256xf32>
    %36 = tpu.matmul %29, %35, %cst_31 {dimension_numbers = #tpu.dot_dimension_numbers<[1], [0], [0], [1], [0, 0, 1, 1], [], []>} : vector<16x8xf32>, vector<8x256xf32>, vector<16x256xf32> -> vector<16x256xf32>
    %c0_32 = arith.constant 0 : index
    %c0_33 = arith.constant 0 : index
    %37 = vector.load %arg7[%c0_32, %c0_33] : memref<8x256xf32, #tpu.memory_space<vmem>>, vector<8x256xf32>
    %cst_34 = arith.constant dense<0.000000e+00> : vector<16x256xf32>
    %38 = tpu.matmul %30, %37, %cst_34 {dimension_numbers = #tpu.dot_dimension_numbers<[1], [0], [0], [1], [0, 0, 1, 1], [], []>} : vector<16x8xf32>, vector<8x256xf32>, vector<16x256xf32> -> vector<16x256xf32>
    %39 = arith.mulf %32, %36 : vector<16x256xf32>
    %40 = arith.mulf %34, %38 : vector<16x256xf32>
    %41 = arith.addf %39, %40 : vector<16x256xf32>
    %c0_35 = arith.constant 0 : index
    %c0_36 = arith.constant 0 : index
    %42 = vector.load %arg8[%c0_35, %c0_36] : memref<256x64xf32, #tpu.memory_space<vmem>>, vector<256x64xf32>
    %cst_37 = arith.constant dense<0.000000e+00> : vector<16x64xf32>
    %43 = tpu.matmul %41, %42, %cst_37 {dimension_numbers = #tpu.dot_dimension_numbers<[1], [0], [0], [1], [0, 0, 1, 1], [], []>} : vector<16x256xf32>, vector<256x64xf32>, vector<16x64xf32> -> vector<16x64xf32>
    %c0_38 = arith.constant 0 : index
    %c0_39 = arith.constant 0 : index
    %44 = vector.load %arg9[%c0_38, %c0_39] : memref<1x64xf32, #tpu.memory_space<vmem>>, vector<1x64xf32>
    %45 = vector.broadcast %44 : vector<1x64xf32> to vector<16x64xf32>
    %46 = arith.addf %43, %45 : vector<16x64xf32>
    %c0_40 = arith.constant 0 : index
    %c0_41 = arith.constant 0 : index
    %47 = vector.load %arg10[%c0_40, %c0_41] : memref<16x64xf32, #tpu.memory_space<vmem>>, vector<16x64xf32>
    tpu.vector_store %arg10[%c0_40, %c0_41], %46 {strides = array<i32>} : memref<16x64xf32, #tpu.memory_space<vmem>>, vector<16x64xf32>,
    return
  }
  func.func @transform_0(%arg0: i32) -> (i32, i32) {
    %c0_i32 = arith.constant 0 : i32
    %c0_i32_0 = arith.constant 0 : i32
    return %arg0, %c0_i32 : i32, i32
  }
  func.func @transform_1(%arg0: i32) -> (i32, i32) {
    %c0_i32 = arith.constant 0 : i32
    %c0_i32_0 = arith.constant 0 : i32
    return %arg0, %c0_i32 : i32, i32
  }
  func.func @transform_2(%arg0: i32) -> (i32, i32, i32) {
    %c0_i32 = arith.constant 0 : i32
    %c0_i32_0 = arith.constant 0 : i32
    %c0_i32_1 = arith.constant 0 : i32
    %c0_i32_2 = arith.constant 0 : i32
    return %c0_i32, %c0_i32_0, %c0_i32_1 : i32, i32, i32
  }
  func.func @transform_3(%arg0: i32) -> (i32, i32) {
    %c0_i32 = arith.constant 0 : i32
    %c0_i32_0 = arith.constant 0 : i32
    %c0_i32_1 = arith.constant 0 : i32
    return %c0_i32, %c0_i32_0 : i32, i32
  }
  func.func @transform_4(%arg0: i32) -> (i32, i32) {
    %c0_i32 = arith.constant 0 : i32
    %c0_i32_0 = arith.constant 0 : i32
    %c0_i32_1 = arith.constant 0 : i32
    return %c0_i32, %c0_i32_0 : i32, i32
  }
  func.func @transform_5(%arg0: i32) -> (i32, i32) {
    %c0_i32 = arith.constant 0 : i32
    %c0_i32_0 = arith.constant 0 : i32
    %c0_i32_1 = arith.constant 0 : i32
    return %c0_i32, %c0_i32_0 : i32, i32
  }
  func.func @transform_6(%arg0: i32) -> (i32, i32) {
    %c0_i32 = arith.constant 0 : i32
    %c0_i32_0 = arith.constant 0 : i32
    %c0_i32_1 = arith.constant 0 : i32
    return %c0_i32, %c0_i32_0 : i32, i32
  }
  func.func @transform_7(%arg0: i32) -> (i32, i32) {
    %c0_i32 = arith.constant 0 : i32
    %c0_i32_0 = arith.constant 0 : i32
    %c0_i32_1 = arith.constant 0 : i32
    return %c0_i32, %c0_i32_0 : i32, i32
  }
  func.func @transform_8(%arg0: i32) -> (i32, i32) {
    %c0_i32 = arith.constant 0 : i32
    %c0_i32_0 = arith.constant 0 : i32
    %c0_i32_1 = arith.constant 0 : i32
    return %c0_i32, %c0_i32_0 : i32, i32
  }
  func.func @transform_9(%arg0: i32) -> (i32, i32) {
    %c0_i32 = arith.constant 0 : i32
    %c0_i32_0 = arith.constant 0 : i32
    return %arg0, %c0_i32 : i32, i32
  }
}

module attributes {stable_mosaic.version = 11 : i64} {
  func.func @_tail_kernel(%arg0: i32, %arg1: memref<16x16xbf16, #tpu.memory_space<vmem>>, %arg2: memref<16x64xbf16, #tpu.memory_space<vmem>>, %arg3: memref<16x64xbf16, #tpu.memory_space<vmem>>, %arg4: memref<64x128xbf16, #tpu.memory_space<vmem>>, %arg5: memref<64x64xbf16, #tpu.memory_space<vmem>>, %arg6: memref<64x64xf32, #tpu.memory_space<vmem>>, %arg7: memref<64x64xf32, #tpu.memory_space<vmem>>, %arg8: memref<64x4xf32, #tpu.memory_space<vmem>>, %arg9: memref<64x4xf32, #tpu.memory_space<vmem>>, %arg10: memref<1x1xf32, #tpu.memory_space<vmem>>, %arg11: memref<16x128xf32, #tpu.memory_space<vmem>>, %arg12: memref<16x4xf32, #tpu.memory_space<vmem>>) attributes {dimension_semantics = [#tpu.dimension_semantics<parallel>], iteration_bounds = array<i64: 1>, scalar_prefetch = 0 : i64, scratch_operands = 0 : i64, tpu.core_type = #tpu.core_type<tc>, window_params = [{transform_indices = @transform_0, window_bounds = array<i64: 16, 16>}, {pipeline_mode = #tpu.pipeline_mode<synchronous>, transform_indices = @transform_1, window_bounds = array<i64: 16, 64>}, {transform_indices = @transform_2, window_bounds = array<i64: 16, 64>}, {pipeline_mode = #tpu.pipeline_mode<synchronous>, transform_indices = @transform_3, window_bounds = array<i64: 64, 128>}, {pipeline_mode = #tpu.pipeline_mode<synchronous>, transform_indices = @transform_4, window_bounds = array<i64: 64, 64>}, {pipeline_mode = #tpu.pipeline_mode<synchronous>, transform_indices = @transform_5, window_bounds = array<i64: 64, 64>}, {pipeline_mode = #tpu.pipeline_mode<synchronous>, transform_indices = @transform_6, window_bounds = array<i64: 64, 64>}, {pipeline_mode = #tpu.pipeline_mode<synchronous>, transform_indices = @transform_7, window_bounds = array<i64: 64, 4>}, {pipeline_mode = #tpu.pipeline_mode<synchronous>, transform_indices = @transform_8, window_bounds = array<i64: 64, 4>}, {pipeline_mode = #tpu.pipeline_mode<synchronous>, transform_indices = @transform_9, window_bounds = array<i64: 1, 1>}, {transform_indices = @transform_10, window_bounds = array<i64: 16, 128>}, {transform_indices = @transform_11, window_bounds = array<i64: 16, 4>}]} {
    %c0 = arith.constant 0 : index
    %c0_0 = arith.constant 0 : index
    %0 = vector.load %arg1[%c0, %c0_0] : memref<16x16xbf16, #tpu.memory_space<vmem>>, vector<16x16xbf16>
    %c0_1 = arith.constant 0 : index
    %c0_2 = arith.constant 0 : index
    %1 = vector.load %arg2[%c0_1, %c0_2] : memref<16x64xbf16, #tpu.memory_space<vmem>>, vector<16x64xbf16>
    %c0_3 = arith.constant 0 : index
    %c0_4 = arith.constant 0 : index
    %2 = vector.load %arg3[%c0_3, %c0_4] : memref<16x64xbf16, #tpu.memory_space<vmem>>, vector<16x64xbf16>
    %c0_5 = arith.constant 0 : index
    %c0_6 = arith.constant 0 : index
    %3 = vector.load %arg4[%c0_5, %c0_6] : memref<64x128xbf16, #tpu.memory_space<vmem>>, vector<64x128xbf16>
    %cst = arith.constant dense<0.000000e+00> : vector<16x128xf32>
    %4 = tpu.matmul %2, %3, %cst {dimension_numbers = #tpu.dot_dimension_numbers<[1], [0], [0], [1], [0, 0, 1, 1], [], []>} : vector<16x64xbf16>, vector<64x128xbf16>, vector<16x128xf32> -> vector<16x128xf32>
    %c0_7 = arith.constant 0 : index
    %c0_8 = arith.constant 0 : index
    %5 = vector.load %arg11[%c0_7, %c0_8] : memref<16x128xf32, #tpu.memory_space<vmem>>, vector<16x128xf32>
    tpu.vector_store %arg11[%c0_7, %c0_8], %4 {strides = array<i32>} : memref<16x128xf32, #tpu.memory_space<vmem>>, vector<16x128xf32>,
    %cst_9 = arith.constant 1.000000e+00 : bf16
    %6 = vector.broadcast %cst_9 : bf16 to vector<16x1xbf16>
    %cst_10 = arith.constant dense<0.000000e+00> : vector<16x1xf32>
    %7 = tpu.matmul %0, %6, %cst_10 {dimension_numbers = #tpu.dot_dimension_numbers<[1], [0], [0], [1], [0, 0, 1, 1], [], []>} : vector<16x16xbf16>, vector<16x1xbf16>, vector<16x1xf32> -> vector<16x1xf32>
    %cst_11 = arith.constant 9.99999996E-13 : f32
    %8 = vector.broadcast %cst_11 : f32 to vector<16x1xf32>
    %9 = arith.maximumf %7, %8 : vector<16x1xf32>
    %10 = tpu.reciprocal %9 {approx = true} : vector<16x1xf32> -> vector<16x1xf32>
    %cst_12 = arith.constant dense<0.000000e+00> : vector<16x64xf32>
    %11 = tpu.matmul %0, %1, %cst_12 {dimension_numbers = #tpu.dot_dimension_numbers<[1], [0], [0], [1], [0, 0, 1, 1], [], []>} : vector<16x16xbf16>, vector<16x64xbf16>, vector<16x64xf32> -> vector<16x64xf32>
    %12 = vector.broadcast %10 : vector<16x1xf32> to vector<16x64xf32>
    %13 = arith.mulf %11, %12 : vector<16x64xf32>
    %14 = arith.mulf %13, %13 : vector<16x64xf32>
    %c0_13 = arith.constant 0 : index
    %c0_14 = arith.constant 0 : index
    %15 = vector.load %arg6[%c0_13, %c0_14] : memref<64x64xf32, #tpu.memory_space<vmem>>, vector<64x64xf32>
    %cst_15 = arith.constant dense<0.000000e+00> : vector<16x64xf32>
    %16 = tpu.matmul %14, %15, %cst_15 {dimension_numbers = #tpu.dot_dimension_numbers<[1], [0], [0], [1], [0, 0, 1, 1], [], []>} : vector<16x64xf32>, vector<64x64xf32>, vector<16x64xf32> -> vector<16x64xf32>
    %cst_16 = arith.constant 1.000000e-24 : f32
    %17 = vector.broadcast %cst_16 : f32 to vector<16x64xf32>
    %18 = arith.maximumf %16, %17 : vector<16x64xf32>
    %19 = math.rsqrt %18 : vector<16x64xf32>
    %20 = arith.mulf %13, %19 : vector<16x64xf32>
    %21 = arith.negf %20 : vector<16x64xf32>
    %22 = math.exp %21 : vector<16x64xf32>
    %cst_17 = arith.constant 1.000000e+00 : f32
    %23 = vector.broadcast %cst_17 : f32 to vector<16x64xf32>
    %24 = arith.addf %23, %22 : vector<16x64xf32>
    %25 = arith.divf %23, %24 : vector<16x64xf32>
    %c0_18 = arith.constant 0 : index
    %c0_19 = arith.constant 0 : index
    %26 = vector.load %arg5[%c0_18, %c0_19] : memref<64x64xbf16, #tpu.memory_space<vmem>>, vector<64x64xbf16>
    %cst_20 = arith.constant dense<0.000000e+00> : vector<16x64xf32>
    %27 = tpu.matmul %2, %26, %cst_20 {dimension_numbers = #tpu.dot_dimension_numbers<[1], [0], [0], [1], [0, 0, 1, 1], [], []>} : vector<16x64xbf16>, vector<64x64xbf16>, vector<16x64xf32> -> vector<16x64xf32>
    %c0_21 = arith.constant 0 : index
    %c0_22 = arith.constant 0 : index
    %28 = vector.load %arg7[%c0_21, %c0_22] : memref<64x64xf32, #tpu.memory_space<vmem>>, vector<64x64xf32>
    %cst_23 = arith.constant dense<0.000000e+00> : vector<16x64xf32>
    %29 = tpu.matmul %25, %28, %cst_23 {dimension_numbers = #tpu.dot_dimension_numbers<[1], [0], [0], [1], [0, 0, 1, 1], [], []>} : vector<16x64xf32>, vector<64x64xf32>, vector<16x64xf32> -> vector<16x64xf32>
    %30 = arith.mulf %27, %25 : vector<16x64xf32>
    %31 = arith.mulf %27, %29 : vector<16x64xf32>
    %c0_24 = arith.constant 0 : index
    %c0_25 = arith.constant 0 : index
    %32 = vector.load %arg8[%c0_24, %c0_25] : memref<64x4xf32, #tpu.memory_space<vmem>>, vector<64x4xf32>
    %cst_26 = arith.constant dense<0.000000e+00> : vector<16x4xf32>
    %33 = tpu.matmul %30, %32, %cst_26 {dimension_numbers = #tpu.dot_dimension_numbers<[1], [0], [0], [1], [0, 0, 1, 1], [], []>} : vector<16x64xf32>, vector<64x4xf32>, vector<16x4xf32> -> vector<16x4xf32>
    %c0_27 = arith.constant 0 : index
    %c0_28 = arith.constant 0 : index
    %34 = vector.load %arg9[%c0_27, %c0_28] : memref<64x4xf32, #tpu.memory_space<vmem>>, vector<64x4xf32>
    %cst_29 = arith.constant dense<0.000000e+00> : vector<16x4xf32>
    %35 = tpu.matmul %31, %34, %cst_29 {dimension_numbers = #tpu.dot_dimension_numbers<[1], [0], [0], [1], [0, 0, 1, 1], [], []>} : vector<16x64xf32>, vector<64x4xf32>, vector<16x4xf32> -> vector<16x4xf32>
    %36 = arith.addf %33, %35 : vector<16x4xf32>
    %c0_30 = arith.constant 0 : index
    %c0_31 = arith.constant 0 : index
    %37 = vector.load %arg10[%c0_30, %c0_31] : memref<1x1xf32, #tpu.memory_space<vmem>>, vector<1x1xf32>
    %38 = vector.broadcast %37 : vector<1x1xf32> to vector<16x4xf32>
    %39 = arith.addf %36, %38 : vector<16x4xf32>
    %c0_32 = arith.constant 0 : index
    %c0_33 = arith.constant 0 : index
    %40 = vector.load %arg12[%c0_32, %c0_33] : memref<16x4xf32, #tpu.memory_space<vmem>>, vector<16x4xf32>
    tpu.vector_store %arg12[%c0_32, %c0_33], %39 {strides = array<i32>} : memref<16x4xf32, #tpu.memory_space<vmem>>, vector<16x4xf32>,
    return
  }
  func.func @transform_0(%arg0: i32) -> (i32, i32) {
    %c0_i32 = arith.constant 0 : i32
    %c0_i32_0 = arith.constant 0 : i32
    return %arg0, %c0_i32 : i32, i32
  }
  func.func @transform_1(%arg0: i32) -> (i32, i32) {
    %c0_i32 = arith.constant 0 : i32
    %c0_i32_0 = arith.constant 0 : i32
    %c0_i32_1 = arith.constant 0 : i32
    return %c0_i32, %c0_i32_0 : i32, i32
  }
  func.func @transform_2(%arg0: i32) -> (i32, i32) {
    %c0_i32 = arith.constant 0 : i32
    %c0_i32_0 = arith.constant 0 : i32
    return %arg0, %c0_i32 : i32, i32
  }
  func.func @transform_3(%arg0: i32) -> (i32, i32) {
    %c0_i32 = arith.constant 0 : i32
    %c0_i32_0 = arith.constant 0 : i32
    %c0_i32_1 = arith.constant 0 : i32
    return %c0_i32, %c0_i32_0 : i32, i32
  }
  func.func @transform_4(%arg0: i32) -> (i32, i32) {
    %c0_i32 = arith.constant 0 : i32
    %c0_i32_0 = arith.constant 0 : i32
    %c0_i32_1 = arith.constant 0 : i32
    return %c0_i32, %c0_i32_0 : i32, i32
  }
  func.func @transform_5(%arg0: i32) -> (i32, i32) {
    %c0_i32 = arith.constant 0 : i32
    %c0_i32_0 = arith.constant 0 : i32
    %c0_i32_1 = arith.constant 0 : i32
    return %c0_i32, %c0_i32_0 : i32, i32
  }
  func.func @transform_6(%arg0: i32) -> (i32, i32) {
    %c0_i32 = arith.constant 0 : i32
    %c0_i32_0 = arith.constant 0 : i32
    %c0_i32_1 = arith.constant 0 : i32
    return %c0_i32, %c0_i32_0 : i32, i32
  }
  func.func @transform_7(%arg0: i32) -> (i32, i32) {
    %c0_i32 = arith.constant 0 : i32
    %c0_i32_0 = arith.constant 0 : i32
    %c0_i32_1 = arith.constant 0 : i32
    return %c0_i32, %c0_i32_0 : i32, i32
  }
  func.func @transform_8(%arg0: i32) -> (i32, i32) {
    %c0_i32 = arith.constant 0 : i32
    %c0_i32_0 = arith.constant 0 : i32
    %c0_i32_1 = arith.constant 0 : i32
    return %c0_i32, %c0_i32_0 : i32, i32
  }
  func.func @transform_9(%arg0: i32) -> (i32, i32) {
    %c0_i32 = arith.constant 0 : i32
    %c0_i32_0 = arith.constant 0 : i32
    %c0_i32_1 = arith.constant 0 : i32
    return %c0_i32, %c0_i32_0 : i32, i32
  }
  func.func @transform_10(%arg0: i32) -> (i32, i32) {
    %c0_i32 = arith.constant 0 : i32
    %c0_i32_0 = arith.constant 0 : i32
    return %arg0, %c0_i32 : i32, i32
  }
  func.func @transform_11(%arg0: i32) -> (i32, i32) {
    %c0_i32 = arith.constant 0 : i32
    %c0_i32_0 = arith.constant 0 : i32
    return %arg0, %c0_i32 : i32, i32
  }
}

</mosaic_0001>

<bundles_post_ra>
// kernel: encoder_forward.3
= control target key start
LH: loop header
LB: loop body
LE: loop exit
PB: predicated region body
PF: predicated region fallthrough
CT: control target
= control target key end

     0   :  { %v548_v0 = vmov 0.0   ;;  %vm549_vm0 = vmmov 0   ;;  %s550_s22 = smov 32   ;;  %vm334_vm1 = vcmask 261120   ;;  %vm345_vm2 = vcmask 519168   ;;  %s682_s2 = inlined_call_operand.vmem [shape: bf16[128,32], index: 2, kind: input, shape index: {}]   ;;  %s683_s1 = inlined_call_operand.vmem [shape: bf16[16,128], index: 1, kind: input, shape index: {}]   ;;  %s684_s3 = inlined_call_operand.vmem [shape: bf16[128,32], index: 3, kind: input, shape index: {}]   ;;  %s685_s0 = inlined_call_operand.vmem [shape: bf16[16,128], index: 0, kind: input, shape index: {}]   ;;  %s686_s4 = inlined_call_operand.vmem [shape: bf16[2,16,64], index: 4, kind: output, shape index: {}]  }
   0x1   :  { %457 = vmatprep.subr.bf16.mxu1 %v548_v0  ;;  %v530_v1 = vld [vmem:[%s682_s2] sm:$0xff]   ;;  %473 = vmatprep.mubr.msk.bf16.mxu1 %vm549_vm0, %v548_v0  ;;  %v531_v2 = vld [vmem:[%s682_s2 + $0x8] sm:$0xff]   ;;  %v532_v3 = vld [vmem:[%s682_s2 + $0x10] sm:$0xff]  }
   0x2   :  { %437 = vmatprep.subr.bf16.mxu0 %v548_v0  ;;  %453 = vmatprep.mubr.msk.bf16.mxu0 %vm549_vm0, %v548_v0  ;;  %v533_v4 = vld [vmem:[%s682_s2 + $0x18] sm:$0xff]   ;;  %v534_v5 = vld [vmem:[%s682_s2 + $0x20] sm:$0xff]   ;;  %v535_v6 = vld [vmem:[%s682_s2 + $0x28] sm:$0xff]  }
   0x3   :  { %458 = vmatpush3.bf16.msra.mxu1 %v530_v1  ;;  %438 = vmatpush3.bf16.msra.mxu0 %v530_v1  ;;  %v536_v7 = vld [vmem:[%s682_s2 + $0x30] sm:$0xff]   ;;  %v537_v8 = vld [vmem:[%s682_s2 + $0x38] sm:$0xff]   ;;  %v538_v9 = vld [vmem:[%s683_s1] sm:$0xff]  }
   0x4   :  { %459 = vmatprep.subr.bf16.mxu1 %v548_v0  ;;  %439 = vmatprep.subr.bf16.mxu0 %v548_v0  ;;  %v547_v10 = vld [vmem:[%s685_s0] sm:$0xff]   ;;  %v540_v12 = vld [vmem:[%s684_s3 + $0x8] sm:$0xff]   ;;  %v541_v13 = vld [vmem:[%s684_s3 + $0x10] sm:$0xff]  }
   0x5   :  { %v539_v11 = vld [vmem:[%s684_s3] sm:$0xff]   ;;  %v542_v14 = vld [vmem:[%s684_s3 + $0x18] sm:$0xff]   ;;  %v544_v16 = vld [vmem:[%s684_s3 + $0x28] sm:$0xff]  }
   0x6   :  { %v543_v15 = vld [vmem:[%s684_s3 + $0x20] sm:$0xff]   ;;  %v545_v17 = vld [vmem:[%s684_s3 + $0x30] sm:$0xff]   ;;  %v546_v18 = vld [vmem:[%s684_s3 + $0x38] sm:$0xff]  }
   0x7   :  { %460 = vmatpush3.bf16.msra.mxu1 %v531_v2  ;;  %440 = vmatpush3.bf16.msra.mxu0 %v531_v2 }
   0x8   :  { %461 = vmatprep.subr.bf16.mxu1 %v548_v0  ;;  %441 = vmatprep.subr.bf16.mxu0 %v548_v0 }
   0xb   :  { %462 = vmatpush3.bf16.msra.mxu1 %v532_v3  ;;  %442 = vmatpush3.bf16.msra.mxu0 %v532_v3 }
   0xc   :  { %463 = vmatprep.subr.bf16.mxu1 %v548_v0  ;;  %443 = vmatprep.subr.bf16.mxu0 %v548_v0 }
   0xf   :  { %464 = vmatpush3.bf16.msra.mxu1 %v533_v4  ;;  %444 = vmatpush3.bf16.msra.mxu0 %v533_v4 }
  0x10   :  { %465 = vmatprep.subr.bf16.mxu1 %v548_v0  ;;  %445 = vmatprep.subr.bf16.mxu0 %v548_v0 }
  0x13   :  { %466 = vmatpush3.bf16.msra.mxu1 %v534_v5  ;;  %446 = vmatpush3.bf16.msra.mxu0 %v534_v5 }
  0x14   :  { %467 = vmatprep.subr.bf16.mxu1 %v548_v0  ;;  %447 = vmatprep.subr.bf16.mxu0 %v548_v0 }
  0x17   :  { %468 = vmatpush3.bf16.msra.mxu1 %v535_v6  ;;  %448 = vmatpush3.bf16.msra.mxu0 %v535_v6 }
  0x18   :  { %469 = vmatprep.subr.bf16.mxu1 %v548_v0  ;;  %449 = vmatprep.subr.bf16.mxu0 %v548_v0 }
  0x1b   :  { %470 = vmatpush3.bf16.msra.mxu1 %v536_v7  ;;  %450 = vmatpush3.bf16.msra.mxu0 %v536_v7 }
  0x1c   :  { %471 = vmatprep.subr.bf16.mxu1 %v548_v0  ;;  %451 = vmatprep.subr.bf16.mxu0 %v548_v0 }
  0x1f   :  { %472 = vmatpush3.bf16.msra.mxu1 %v537_v8  ;;  %452 = vmatpush3.bf16.msra.mxu0 %v537_v8 }
  0x20   :  { %497 = vmatprep.subr.bf16.mxu1 %v548_v0  ;;  %477 = vmatprep.subr.bf16.mxu0 %v548_v0 }
  0x22   :  { %474 = vmatmul.mubr.bf16.vlgmr.msra.gmra.mrb[0].mxu1 %v538_v9  ;;  %454 = vmatmul.mubr.bf16.vlgmr.msra.gmra.mrb[0].mxu0 %v547_v10 }
  0x23   :  { %498 = vmatpush3.bf16.msra.mxu1 %v539_v11  ;;  %513 = vmatprep.mubr.msk.bf16.mxu1 %vm549_vm0, %v548_v0 }
  0x24   :  { %499 = vmatprep.subr.bf16.mxu1 %v548_v0  ;;  %478 = vmatpush3.bf16.msra.mxu0 %v539_v11 }
  0x25   :  { %479 = vmatprep.subr.bf16.mxu0 %v548_v0  ;;  %493 = vmatprep.mubr.msk.bf16.mxu0 %vm549_vm0, %v548_v0 }
  0x27   :  { %500 = vmatpush3.bf16.msra.mxu1 %v540_v12 }
  0x28   :  { %501 = vmatprep.subr.bf16.mxu1 %v548_v0  ;;  %480 = vmatpush3.bf16.msra.mxu0 %v540_v12 }
  0x29   :  { %481 = vmatprep.subr.bf16.mxu0 %v548_v0 }
  0x2b   :  { %502 = vmatpush3.bf16.msra.mxu1 %v541_v13 }
  0x2c   :  { %503 = vmatprep.subr.bf16.mxu1 %v548_v0  ;;  %482 = vmatpush3.bf16.msra.mxu0 %v541_v13 }
  0x2d   :  { %483 = vmatprep.subr.bf16.mxu0 %v548_v0 }
  0x2f   :  { %504 = vmatpush3.bf16.msra.mxu1 %v542_v14 }
  0x30   :  { %505 = vmatprep.subr.bf16.mxu1 %v548_v0  ;;  %484 = vmatpush3.bf16.msra.mxu0 %v542_v14 }
  0x31   :  { %485 = vmatprep.subr.bf16.mxu0 %v548_v0 }
  0x33   :  { %506 = vmatpush3.bf16.msra.mxu1 %v543_v15 }
  0x34   :  { %507 = vmatprep.subr.bf16.mxu1 %v548_v0  ;;  %486 = vmatpush3.bf16.msra.mxu0 %v543_v15 }
  0x35   :  { %487 = vmatprep.subr.bf16.mxu0 %v548_v0 }
  0x37   :  { %508 = vmatpush3.bf16.msra.mxu1 %v544_v16 }
  0x38   :  { %509 = vmatprep.subr.bf16.mxu1 %v548_v0  ;;  %488 = vmatpush3.bf16.msra.mxu0 %v544_v16 }
  0x39   :  { %489 = vmatprep.subr.bf16.mxu0 %v548_v0 }
  0x3b   :  { %510 = vmatpush3.bf16.msra.mxu1 %v545_v17 }
  0x3c   :  { %511 = vmatprep.subr.bf16.mxu1 %v548_v0  ;;  %490 = vmatpush3.bf16.msra.mxu0 %v545_v17 }
  0x3d   :  { %491 = vmatprep.subr.bf16.mxu0 %v548_v0 }
  0x3f   :  { %512 = vmatpush3.bf16.msra.mxu1 %v546_v18 }
  0x40   :  { %492 = vmatpush3.bf16.msra.mxu0 %v546_v18 }
  0x42   :  { %514 = vmatmul.mubr.bf16.vlgmr.msra.gmra.mrb[4].mxu1 %v538_v9 }
  0x43   :  { %494 = vmatmul.mubr.bf16.vlgmr.msra.gmra.mrb[4].mxu0 %v547_v10 }
  0xf5   :  { %v189_v19 = vpop.f32.mrb[0].mxu1  ;;  %v142_v20 = vpop.f32.mrb[0].mxu0 }
  0xf6   :  { %v475_v21 = vpop.f32.mrb[1].mxu1  ;;  %v455_v22 = vpop.f32.mrb[1].mxu0 }
  0xf7   :  { %v192_v23 = vpop.f32.mrb[2].mxu1  ;;  %v145_v24 = vpop.f32.mrb[2].mxu0 }
  0xf8   :  { %v520_v25 = vpack.i.bf16 %v192_v23, %v189_v19  ;;  %v476_v26 = vpop.f32.mrb[3].mxu1  ;;  %v456_v27 = vpop.f32.mrb[3].mxu0 }
  0xfa   :  { %521 = vrot.lane.b32.xlu0 %v520_v25, %s550_s22 }
 0x115   :  { %v319_v28 = vpop.f32.mrb[4].mxu1 }
 0x116   :  { %v515_v29 = vpop.f32.mrb[5].mxu1  ;;  %v278_v30 = vpop.f32.mrb[4].mxu0 }
 0x117   :  { %v322_v31 = vpop.f32.mrb[6].mxu1  ;;  %v495_v32 = vpop.f32.mrb[5].mxu0 }
 0x118   :  { %v525_v33 = vpack.i.bf16 %v322_v31, %v319_v28  ;;  %v516_v34 = vpop.f32.mrb[7].mxu1  ;;  %v281_v35 = vpop.f32.mrb[6].mxu0 }
 0x119   :  { %v496_v36 = vpop.f32.mrb[7].mxu0 }
 0x11a   :  { %526 = vrot.lane.b32.xlu0 %v525_v33, %s550_s22 }
 0x16c   :  { %v522_v37 = vpop.permute.xlu0 %521 }
 0x16d   :  { %v524_v38 = vunpack.i.h.bf16 %v522_v37  ;;  %v523_v39 = vunpack.i.l.bf16 %v522_v37 }
 0x16f   :  { %v335_v40 = vsel %vm334_vm1, %v142_v20, %v523_v39  ;;  %v336_v41 = vsel %vm334_vm1, %v145_v24, %v524_v38 }
 0x170   :  { %v397_v42 = vpack.c.bf16 %v335_v40, %v335_v40  ;;  %v398_v43 = vpack.c.bf16 %v336_v41, %v336_v41 }
 0x172   :  { %346 = vst.msk [vmem:[%s686_s4] sm:$0xf] %vm345_vm2, %v397_v42  ;;  %347 = vst.msk [vmem:[%s686_s4 + $0x4] sm:$0xf] %vm345_vm2, %v398_v43 }
 0x18c   :  { %v527_v44 = vpop.permute.xlu0 %526 }
 0x18d   :  { %v529_v45 = vunpack.i.h.bf16 %v527_v44  ;;  %v528_v46 = vunpack.i.l.bf16 %v527_v44 }
 0x18f   :  { %v356_v47 = vsel %vm334_vm1, %v278_v30, %v528_v46  ;;  %v357_v48 = vsel %vm334_vm1, %v281_v35, %v529_v45 }
 0x190   :  { %v399_v49 = vpack.c.bf16 %v356_v47, %v356_v47  ;;  %v400_v50 = vpack.c.bf16 %v357_v48, %v357_v48 }
 0x192   :  { %395 = vst.msk [vmem:[%s686_s4 + $0x8] sm:$0xf] %vm345_vm2, %v399_v49  ;;  %396 = vst.msk [vmem:[%s686_s4 + $0xc] sm:$0xf] %vm345_vm2, %v400_v50 }

// kernel: encoder_forward.4
= control target key start
LH: loop header
LB: loop body
LE: loop exit
PB: predicated region body
PF: predicated region fallthrough
CT: control target
= control target key end

     0   :  { %v1340_v0 = vmov 0.0   ;;  %vm1341_vm0 = vmmov 0   ;;  %vm48_vm1 = vcmask 130048   ;;  %vm161_vm2 = vcmask 523264   ;;  %s1681_s2 = inlined_call_operand.vmem [shape: bf16[2,16,64], index: 2, kind: input, shape index: {}]   ;;  %s1682_s0 = inlined_call_operand.vmem [shape: bf16[16,16], index: 0, kind: input, shape index: {}]   ;;  %s1683_s1 = inlined_call_operand.vmem [shape: bf16[16,16], index: 1, kind: input, shape index: {}]   ;;  %s1684_s3 = inlined_call_operand.vmem [shape: f32[64,64], index: 3, kind: input, shape index: {}]   ;;  %s1685_s4 = inlined_call_operand.vmem [shape: f32[64,8], index: 4, kind: input, shape index: {}]   ;;  %s1686_s5 = inlined_call_operand.vmem [shape: f32[64,256], index: 5, kind: input, shape index: {}]   ;;  %s1687_s6 = inlined_call_operand.vmem [shape: f32[8,256], index: 6, kind: input, shape index: {}]   ;;  %s1688_s7 = inlined_call_operand.vmem [shape: f32[256,64], index: 7, kind: input, shape index: {}]   ;;  %s1689_s8 = inlined_call_operand.vmem [shape: f32[1,64], index: 8, kind: input, shape index: {}]   ;;  %s1690_s9 = inlined_call_operand.vmem [shape: f32[16,64], index: 9, kind: output, shape index: {}]  }
   0x1   :  { %1098 = vmatprep.subr.bf16.mxu0 %v1340_v0  ;;  %v1316_v1 = vld [vmem:[%s1681_s2] sm:$0xff]   ;;  %1100 = vmatprep.mubr.msk.bf16.mxu0 %vm1341_vm0, %v1340_v0  ;;  %v1318_v3 = vld [vmem:[%s1681_s2 + $0x8] sm:$0xff]   ;;  %v155_v7 = vld [vmem:[%s1684_s3 + $0x10] sm:$0xff]  ;;  %vm692_vm3 = vcmask 64512  }
   0x2   :  { %v1317_v2 = vld [vmem:[%s1682_s0] sm:$0xff]   ;;  %1104 = vmatprep.subr.bf16.mxu1 %v1340_v0  ;;  %1106 = vmatprep.mubr.msk.bf16.mxu1 %vm1341_vm0, %v1340_v0  ;;  %v154_v6 = vld [vmem:[%s1684_s3 + $0x8] sm:$0xff]  ;;  %v156_v9 = vld [vmem:[%s1684_s3 + $0x18] sm:$0xff] }
   0x3   :  { %1099 = vmatpush3.bf16.msra.mxu0 %v1316_v1  ;;  %v1319_v4 = vld [vmem:[%s1683_s1] sm:$0xff]   ;;  %1105 = vmatpush3.bf16.msra.mxu1 %v1318_v3  ;;  %v1190_v10 = vpack.c.bf16 %v156_v9, %v155_v7  ;;  %v158_v12 = vld [vmem:[%s1684_s3 + $0x28] sm:$0xff]  ;;  %v159_v14 = vld [vmem:[%s1684_s3 + $0x30] sm:$0xff] }
   0x4   :  { %v153_v5 = vld [vmem:[%s1684_s3] sm:$0xff]  ;;  %v160_v15 = vld [vmem:[%s1684_s3 + $0x38] sm:$0xff]  ;;  %v329_v18 = vld [vmem:[%s1685_s4 + $0x8] sm:$0xff] }
   0x5   :  { %v1186_v8 = vpack.c.bf16 %v154_v6, %v153_v5  ;;  %v157_v11 = vld [vmem:[%s1684_s3 + $0x20] sm:$0xff]  ;;  %v1198_v16 = vpack.c.bf16 %v160_v15, %v159_v14  ;;  %v330_v28 = vld [vmem:[%s1685_s4 + $0x10] sm:$0xff]  ;;  %v331_v29 = vld [vmem:[%s1685_s4 + $0x18] sm:$0xff] }
   0x6   :  { %1101 = vmatmul.mubr.msk.bf16.vlgmr.msra.gmra.mrb[0].mxu0 %vm48_vm1, %v1317_v2  ;;  %1107 = vmatmul.mubr.msk.bf16.vlgmr.msra.gmra.mrb[0].mxu1 %vm48_vm1, %v1319_v4  ;;  %v1194_v13 = vpack.c.bf16 %v158_v12, %v157_v11  ;;  %v328_v17 = vld [vmem:[%s1685_s4] sm:$0xff]  ;;  %v1222_v30 = vpack.c.bf16 %v331_v29, %v330_v28  ;;  %v333_v32 = vld [vmem:[%s1685_s4 + $0x28] sm:$0xff]  ;;  %v334_v33 = vld [vmem:[%s1685_s4 + $0x30] sm:$0xff] }
   0x7   :  { %1187 = vmatprep.subr.bf16.mxu1 %v1186_v8  ;;  %v1218_v19 = vpack.c.bf16 %v329_v18, %v328_v17  ;;  %v332_v31 = vld [vmem:[%s1685_s4 + $0x20] sm:$0xff]  ;;  %v335_v35 = vld [vmem:[%s1685_s4 + $0x38] sm:$0xff]  ;;  %v521_v37 = vld [vmem:[%s1686_s5 + $0x8] sm:$0xff] }
   0x8   :  { %1189 = vmatpush3.bf16.msra.mxu1 %v1186_v8  ;;  %v1226_v34 = vpack.c.bf16 %v333_v32, %v332_v31  ;;  %v1230_v36 = vpack.c.bf16 %v335_v35, %v334_v33  ;;  %v523_v38 = vld [vmem:[%s1686_s5 + $0x18] sm:$0xff]  ;;  %v520_v42 = vld [vmem:[%s1686_s5] sm:$0xff]  ;;  %v522_v43 = vld [vmem:[%s1686_s5 + $0x10] sm:$0xff] }
   0x9   :  { %1191 = vmatprep.subr.bf16.mxu1 %v1190_v10  ;;  %1219 = vmatprep.subr.bf16.mxu0 %v1218_v19  ;;  %v1250_v39 = vpack.c.bf16 %v523_v38, %v521_v37  ;;  %v525_v44 = vld [vmem:[%s1686_s5 + $0x28] sm:$0xff]  ;;  %v527_v45 = vld [vmem:[%s1686_s5 + $0x38] sm:$0xff]  ;;  %v1252_v46 = vpack.c.bf16 %v522_v43, %v520_v42  ;;  %v524_v49 = vld [vmem:[%s1686_s5 + $0x20] sm:$0xff] }
   0xa   :  { %1221 = vmatpush3.bf16.msra.mxu0 %v1218_v19  ;;  %v1254_v48 = vpack.c.bf16 %v527_v45, %v525_v44  ;;  %v526_v50 = vld [vmem:[%s1686_s5 + $0x30] sm:$0xff]  ;;  %v529_v52 = vld [vmem:[%s1686_s5 + $0x48] sm:$0xff]  ;;  %v531_v53 = vld [vmem:[%s1686_s5 + $0x58] sm:$0xff] }
   0xb   :  { %1223 = vmatprep.subr.bf16.mxu0 %v1222_v30  ;;  %v1256_v54 = vpack.c.bf16 %v526_v50, %v524_v49  ;;  %v1258_v56 = vpack.c.bf16 %v531_v53, %v529_v52  ;;  %v528_v57 = vld [vmem:[%s1686_s5 + $0x40] sm:$0xff]  ;;  %v530_v58 = vld [vmem:[%s1686_s5 + $0x50] sm:$0xff]  ;;  %v533_v60 = vld [vmem:[%s1686_s5 + $0x68] sm:$0xff] }
   0xc   :  { %1193 = vmatpush3.bf16.msra.mxu1 %v1190_v10  ;;  %v535_v61 = vld [vmem:[%s1686_s5 + $0x78] sm:$0xff]  ;;  %v1260_v62 = vpack.c.bf16 %v530_v58, %v528_v57  ;;  %v532_v1 = vld [vmem:[%s1686_s5 + $0x60] sm:$0xff]  ;;  %v534_v2 = vld [vmem:[%s1686_s5 + $0x70] sm:$0xff] }
   0xd   :  { %1195 = vmatprep.subr.bf16.mxu1 %v1194_v13  ;;  %v1262_v63 = vpack.c.bf16 %v535_v61, %v533_v60  ;;  %v1264_v3 = vpack.c.bf16 %v534_v2, %v532_v1  ;;  %v691_v6 = vld [vmem:[%s1687_s6 + $0x8] sm:$0xff]  ;;  %v690_v7 = vld [vmem:[%s1687_s6] sm:$0xff]  ;;  %v890_v49 = vld [vmem:[%s1688_s7 + $0x98] sm:$0xff] }
   0xe   :  { %1225 = vmatpush3.bf16.msra.mxu0 %v1222_v30  ;;  %v888_v9 = vld [vmem:[%s1688_s7 + $0x88] sm:$0xff]  ;;  %v871_v44 = vld [vmem:[%s1688_s7] sm:$0xff] }
   0xf   :  { %1227 = vmatprep.subr.bf16.mxu0 %v1226_v34  ;;  %v872_v45 = vld [vmem:[%s1688_s7 + $0x8] sm:$0xff]  ;;  %v891_v57 = vld [vmem:[%s1688_s7 + $0xa0] sm:$0xff] }
  0x10   :  { %1197 = vmatpush3.bf16.msra.mxu1 %v1194_v13  ;;  %v1284_v53 = vpack.c.bf16 %v872_v45, %v871_v44  ;;  %v892_v58 = vld [vmem:[%s1688_s7 + $0xa8] sm:$0xff]  ;;  %v875_v61 = vld [vmem:[%s1688_s7 + $0x20] sm:$0xff] }
  0x11   :  { %1199 = vmatprep.subr.bf16.mxu1 %v1198_v16  ;;  %v1290_v60 = vpack.c.bf16 %v892_v58, %v891_v57 }
  0x12   :  { %1229 = vmatpush3.bf16.msra.mxu0 %v1226_v34 }
  0x13   :  { %1231 = vmatprep.subr.bf16.mxu0 %v1230_v36 }
  0x14   :  { %1201 = vmatpush3.bf16.msra.mxu1 %v1198_v16 }
  0x15   :  { %1203 = vmatprep.subr.bf16.mxu1 %v1186_v8 }
  0x16   :  { %1233 = vmatpush3.bf16.msra.mxu0 %v1230_v36 }
  0x17   :  { %1251 = vmatprep.subr.bf16.mxu0 %v1250_v39 }
  0xd9   :  { %v1438_v20 = vpop.f32.mrb[0].mxu0  ;;  %v1444_v23 = vpop.f32.mrb[0].mxu1 }
  0xda   :  { %v1102_v21 = vpop.f32.mrb[1].mxu0  ;;  %1126 = vmatprep.mubr.msk.f32.mxu1 %vm161_vm2, %v1438_v20  ;;  %v1108_v25 = vpop.f32.mrb[1].mxu1 }
  0xdb   :  { %v1442_v22 = vpop.f32.mrb[2].mxu0  ;;  %v1448_v26 = vpop.f32.mrb[2].mxu1 }
  0xdc   :  { %v1103_v24 = vpop.f32.mrb[3].mxu0  ;;  %1127 = vmatmul.mubr.msk.f32.vlgmr.msra.gmra.mrb[4].mxu1 %vm161_vm2, %v1442_v22  ;;  %v1109_v27 = vpop.f32.mrb[3].mxu1 }
  0xdd   :  { %1205 = vmatpush3.bf16.msra.mxu1 %v1186_v8  ;;  %1145 = vmatprep.mubr.msk.f32.mxu1 %vm161_vm2, %v1444_v23  ;;  %v887_v8 = vld [vmem:[%s1688_s7 + $0x80] sm:$0xff] }
  0xde   :  { %1207 = vmatprep.subr.bf16.mxu1 %v1190_v10 }
  0xe1   :  { %1209 = vmatpush3.bf16.msra.mxu1 %v1190_v10  ;;  %v1282_v10 = vpack.c.bf16 %v888_v9, %v887_v8  ;;  %v879_v9 = vld [vmem:[%s1688_s7 + $0x40] sm:$0xff] }
  0xe2   :  { %1211 = vmatprep.subr.bf16.mxu1 %v1194_v13 }
  0xe5   :  { %1213 = vmatpush3.bf16.msra.mxu1 %v1194_v13 }
  0xe6   :  { %1215 = vmatprep.subr.bf16.mxu1 %v1198_v16 }
  0xe9   :  { %1217 = vmatpush3.bf16.msra.mxu1 %v1198_v16 }
  0xea   :  { %1235 = vmatprep.subr.bf16.mxu1 %v1218_v19 }
  0xec   :  { %1146 = vmatmul.mubr.msk.f32.vlgmr.msra.gmra.mrb[6].mxu1 %vm161_vm2, %v1448_v26 }
  0xed   :  { %1237 = vmatpush3.bf16.msra.mxu1 %v1218_v19 }
  0xee   :  { %1239 = vmatprep.subr.bf16.mxu1 %v1222_v30 }
  0xf1   :  { %1241 = vmatpush3.bf16.msra.mxu1 %v1222_v30 }
  0xf2   :  { %1243 = vmatprep.subr.bf16.mxu1 %v1226_v34 }
  0xf5   :  { %1245 = vmatpush3.bf16.msra.mxu1 %v1226_v34 }
  0xf6   :  { %1247 = vmatprep.subr.bf16.mxu1 %v1230_v36 }
  0xf9   :  { %1249 = vmatpush3.bf16.msra.mxu1 %v1230_v36 }
  0xfa   :  { %1267 = vmatprep.subr.bf16.mxu1 %v1250_v39 }
 0x1af   :  { %v1128_v40 = vpop.f32.mrb[4].mxu1 }
 0x1b0   :  { %v234_v41 = vpop.f32.mrb[5].mxu1 }
 0x1b1   :  { %1320 = vtanh.f32 %v234_v41 }
 0x1b2   :  { %1322 = vtanh.f32 %v1128_v40 }
 0x1bb   :  { %v1321_v47 = vpop.eup %1320 }
 0x1bc   :  { %v1323_v51 = vpop.eup %1322  ;;  %1164 = vmatprep.mubr.msk.f32.mxu0 %vm161_vm2, %v1321_v47 }
 0x1bd   :  { %1165 = vmatmul.mubr.msk.f32.vlgmr.msra.gmra.mrb[4].mxu0 %vm161_vm2, %v1323_v51 }
 0x1be   :  { %1253 = vmatpush1.bf16.msra.mxu0 %v1252_v46  ;;  %600 = vmatprep.mubr.f32.mxu0 %v1340_v0 }
 0x1bf   :  { %v1147_v55 = vpop.f32.mrb[6].mxu1  ;;  %1255 = vmatprep.subr.bf16.mxu0 %v1254_v48 }
 0x1c0   :  { %v317_v59 = vpop.f32.mrb[7].mxu1 }
 0x1c1   :  { %1324 = vtanh.f32 %v317_v59 }
 0x1c2   :  { %1326 = vtanh.f32 %v1147_v55  ;;  %1257 = vmatpush1.bf16.msra.mxu0 %v1256_v54  ;;  %v873_v55 = vld [vmem:[%s1688_s7 + $0x10] sm:$0xff] }
 0x1c3   :  { %1259 = vmatprep.subr.bf16.mxu0 %v1258_v56 }
 0x1c6   :  { %1261 = vmatpush1.bf16.msra.mxu0 %v1260_v62 }
 0x1c7   :  { %1263 = vmatprep.subr.bf16.mxu0 %v1262_v63 }
 0x1ca   :  { %1265 = vmatpush1.bf16.msra.mxu0 %v1264_v3 }
 0x1cb   :  { %v1325_v4 = vpop.eup %1324  ;;  %699 = vmatprep.subr.mxu0 %v691_v6 }
 0x1cc   :  { %v1327_v5 = vpop.eup %1326  ;;  %1183 = vmatprep.mubr.msk.f32.mxu1 %vm161_vm2, %v1325_v4  ;;  %v878_v4 = vld [vmem:[%s1688_s7 + $0x38] sm:$0xff] }
 0x1cd   :  { %1184 = vmatmul.mubr.msk.f32.vlgmr.msra.gmra.mrb[8].mxu1 %vm161_vm2, %v1327_v5  ;;  %1007 = vmatmul.mubr.msk.f32.vlgmr.msra.gmra.mrb[6].mxu0 %vm161_vm2, %v1438_v20  ;;  %v895_v5 = vld [vmem:[%s1688_s7 + $0xc0] sm:$0xff] }
 0x1ce   :  { %1269 = vmatpush1.bf16.msra.mxu1 %v1252_v46  ;;  %606 = vmatprep.mubr.f32.mxu0 %v1340_v0 }
 0x1cf   :  { %1271 = vmatprep.subr.bf16.mxu1 %v1254_v48  ;;  %677 = vmatprep.mubr.f32.mxu1 %v1340_v0  ;;  %v889_v48 = vld [vmem:[%s1688_s7 + $0x90] sm:$0xff] }
 0x1d0   :  { %700 = vmatpush1.msra.mxu0 %v690_v7 }
 0x1d1   :  { %1008 = vmatmul.mubr.msk.f32.gmra.mrb[8].mxu0 %vm161_vm2, %v1442_v22  ;;  %1283 = vmatprep.subr.bf16.mxu0 %v1282_v10  ;;  %v880_v10 = vld [vmem:[%s1688_s7 + $0x48] sm:$0xff] }
 0x1d2   :  { %1273 = vmatpush1.bf16.msra.mxu1 %v1256_v54  ;;  %763 = vmatprep.mubr.f32.mxu0 %v1340_v0  ;;  %v1286_v54 = vpack.c.bf16 %v890_v49, %v889_v48 }
 0x1d3   :  { %1275 = vmatprep.subr.bf16.mxu1 %v1258_v56  ;;  %v874_v56 = vld [vmem:[%s1688_s7 + $0x18] sm:$0xff] }
 0x1d4   :  { %v1288_v59 = vpack.c.bf16 %v874_v56, %v873_v55  ;;  %v1015_v55 = vld [vmem:[%s1689_s8] ss:$0 sm:$0xff] }
 0x1d6   :  { %1277 = vmatpush1.bf16.msra.mxu1 %v1260_v62  ;;  %v876_v62 = vld [vmem:[%s1688_s7 + $0x28] sm:$0xff] }
 0x1d7   :  { %1279 = vmatprep.subr.bf16.mxu1 %v1262_v63  ;;  %v894_v63 = vld [vmem:[%s1688_s7 + $0xb8] sm:$0xff]  ;;  %v1292_v1 = vpack.c.bf16 %v876_v62, %v875_v61 }
 0x1da   :  { %1281 = vmatpush1.bf16.msra.mxu1 %v1264_v3  ;;  %v877_v3 = vld [vmem:[%s1688_s7 + $0x30] sm:$0xff] }
 0x1db   :  { %782 = vmatprep.subr.mxu1 %v691_v6  ;;  %v896_v6 = vld [vmem:[%s1688_s7 + $0xc8] sm:$0xff] }
 0x1dc   :  { %v1298_v8 = vpack.c.bf16 %v896_v6, %v895_v5 }
 0x1dd   :  { %1009 = vmatmul.mubr.msk.f32.vlgmr.msra.gmra.mrb[10].mxu1 %vm161_vm2, %v1444_v23 }
 0x1de   :  { %683 = vmatprep.mubr.f32.mxu1 %v1340_v0  ;;  %783 = vmatpush1.msra.mxu1 %v690_v7  ;;  %v1296_v7 = vpack.c.bf16 %v878_v4, %v877_v3 }
 0x1e1   :  { %1010 = vmatmul.mubr.msk.f32.gmra.mrb[12].mxu1 %vm161_vm2, %v1448_v26 }
 0x1e2   :  { %846 = vmatprep.mubr.f32.mxu1 %v1340_v0 }
 0x290   :  { %v1166_v11 = vpop.f32.mrb[4].mxu0 }
 0x291   :  { %v408_v12 = vpop.f32.mrb[5].mxu0  ;;  %v414_v15 = vadd.f32 1e-06, %v1166_v11  ;;  %v897_v11 = vld [vmem:[%s1688_s7 + $0xd0] sm:$0xff] }
 0x292   :  { %v409_v19 = vadd.f32 1e-06, %v408_v12  ;;  %v898_v12 = vld [vmem:[%s1688_s7 + $0xd8] sm:$0xff] }
 0x2a0   :  { %v1185_v13 = vpop.f32.mrb[8].mxu1  ;;  %v1550_v14 = vpop.f32.mrb[6].mxu0 }
 0x2a1   :  { %v495_v16 = vadd.f32 1e-06, %v1185_v13  ;;  %v489_v17 = vpop.f32.mrb[9].mxu1  ;;  %v1552_v18 = vpop.f32.mrb[7].mxu0  ;;  %v1300_v13 = vpack.c.bf16 %v880_v10, %v879_v9 }
 0x2a2   :  { %v490_v20 = vadd.f32 1e-06, %v489_v17  ;;  %v882_v17 = vld [vmem:[%s1688_s7 + $0x58] sm:$0xff] }
 0x2a3   :  { %v499_v21 = vmax.f32 %v414_v15, %v495_v16 }
 0x2a4   :  { %v498_v22 = vmax.f32 %v409_v19, %v490_v20  ;;  %v1554_v23 = vpop.f32.mrb[8].mxu0 }
 0x2a5   :  { %v501_v24 = vsub.f32 %v414_v15, %v499_v21  ;;  %v507_v25 = vsub.f32 %v495_v16, %v499_v21  ;;  %v1556_v26 = vpop.f32.mrb[9].mxu0  ;;  %v1302_v15 = vpack.c.bf16 %v898_v12, %v897_v11  ;;  %v881_v16 = vld [vmem:[%s1688_s7 + $0x50] sm:$0xff] }
 0x2a6   :  { %v500_v27 = vsub.f32 %v409_v19, %v498_v22  ;;  %v506_v28 = vsub.f32 %v490_v20, %v498_v22  ;;  %v899_v19 = vld [vmem:[%s1688_s7 + $0xe0] sm:$0xff]  ;;  %v900_v20 = vld [vmem:[%s1688_s7 + $0xe8] sm:$0xff]  ;;  %v1304_v21 = vpack.c.bf16 %v882_v17, %v881_v16 }
 0x2a7   :  { %v504_v29 = vmul.f32 1.442695, %v501_v24  ;;  %v510_v30 = vmul.f32 1.442695, %v507_v25  ;;  %v1306_v22 = vpack.c.bf16 %v900_v20, %v899_v19  ;;  %v883_v24 = vld [vmem:[%s1688_s7 + $0x60] sm:$0xff]  ;;  %v884_v25 = vld [vmem:[%s1688_s7 + $0x68] sm:$0xff] }
 0x2a8   :  { %v502_v31 = vmul.f32 1.442695, %v500_v27  ;;  %v508_v32 = vmul.f32 1.442695, %v506_v28  ;;  %v1308_v27 = vpack.c.bf16 %v884_v25, %v883_v24  ;;  %v901_v28 = vld [vmem:[%s1688_s7 + $0xf0] sm:$0xff] }
 0x2a9   :  { %1328 = vpow2.f32 %v504_v29  ;;  %v902_v29 = vld [vmem:[%s1688_s7 + $0xf8] sm:$0xff] }
 0x2aa   :  { %1330 = vpow2.f32 %v510_v30  ;;  %v1310_v30 = vpack.c.bf16 %v902_v29, %v901_v28 }
 0x2ab   :  { %1332 = vpow2.f32 %v502_v31  ;;  %v885_v31 = vld [vmem:[%s1688_s7 + $0x70] sm:$0xff] }
 0x2ac   :  { %1334 = vpow2.f32 %v508_v32  ;;  %v886_v32 = vld [vmem:[%s1688_s7 + $0x78] sm:$0xff] }
 0x2b0   :  { %v1558_v33 = vpop.f32.mrb[10].mxu1 }
 0x2b1   :  { %v1560_v34 = vpop.f32.mrb[11].mxu1 }
 0x2b3   :  { %v1329_v35 = vpop.eup %1328 }
 0x2b4   :  { %v1331_v36 = vpop.eup %1330  ;;  %v1562_v37 = vpop.f32.mrb[12].mxu1 }
 0x2b5   :  { %v1333_v38 = vpop.eup %1332  ;;  %v513_v39 = vadd.f32 %v1331_v36, %v1329_v35  ;;  %v1564_v40 = vpop.f32.mrb[13].mxu1 }
 0x2b6   :  { %v1335_v41 = vpop.eup %1334 }
 0x2b7   :  { %1336 = vrcp.f32 %v513_v39  ;;  %v512_v42 = vadd.f32 %v1335_v41, %v1333_v38 }
 0x2b9   :  { %1338 = vrcp.f32 %v512_v42 }
 0x2c1   :  { %v1337_v43 = vpop.eup %1336 }
 0x2c2   :  { %v517_v46 = vmul.f32 %v1337_v43, %v1329_v35  ;;  %v519_v47 = vmul.f32 %v1337_v43, %v1331_v36  ;;  %v1312_v35 = vpack.c.bf16 %v886_v32, %v885_v31 }
 0x2c3   :  { %v1339_v50 = vpop.eup %1338 }
 0x2c4   :  { %v516_v51 = vmul.f32 %v1339_v50, %v1333_v38  ;;  %v518_v52 = vmul.f32 %v1339_v50, %v1335_v41 }
 0x2c6   :  { %1011 = vmatmul.mubr.msk.f32.vlgmr.msra.gmra.mrb[10].mxu0 %vm692_vm3, %v516_v51  ;;  %1013 = vmatmul.mubr.msk.f32.vlgmr.msra.gmra.mrb[14].mxu1 %vm692_vm3, %v518_v52 }
 0x2c7   :  { %769 = vmatprep.mubr.f32.mxu0 %v1340_v0  ;;  %852 = vmatprep.mubr.f32.mxu1 %v1340_v0  ;;  %v893_v0 = vld [vmem:[%s1688_s7 + $0xb0] sm:$0xff] }
 0x2c8   :  { %1285 = vmatpush3.bf16.msra.mxu0 %v1284_v53  ;;  %v1294_v2 = vpack.c.bf16 %v894_v63, %v893_v0 }
 0x2c9   :  { %1287 = vmatprep.subr.bf16.mxu0 %v1286_v54 }
 0x2ca   :  { %1012 = vmatmul.mubr.msk.f32.gmra.mrb[12].mxu0 %vm692_vm3, %v517_v46  ;;  %1014 = vmatmul.mubr.msk.f32.gmra.mrb[16].mxu1 %vm692_vm3, %v519_v47 }
 0x2cc   :  { %1289 = vmatpush3.bf16.msra.mxu0 %v1288_v59 }
 0x2cd   :  { %1291 = vmatprep.subr.bf16.mxu0 %v1290_v60 }
 0x2d0   :  { %1293 = vmatpush3.bf16.msra.mxu0 %v1292_v1 }
 0x2d1   :  { %1295 = vmatprep.subr.bf16.mxu0 %v1294_v2 }
 0x2d4   :  { %1297 = vmatpush3.bf16.msra.mxu0 %v1296_v7 }
 0x2d5   :  { %1299 = vmatprep.subr.bf16.mxu0 %v1298_v8 }
 0x2d8   :  { %1301 = vmatpush3.bf16.msra.mxu0 %v1300_v13 }
 0x2d9   :  { %1303 = vmatprep.subr.bf16.mxu0 %v1302_v15 }
 0x2dc   :  { %1305 = vmatpush3.bf16.msra.mxu0 %v1304_v21 }
 0x2dd   :  { %1307 = vmatprep.subr.bf16.mxu0 %v1306_v22 }
 0x2e0   :  { %1309 = vmatpush3.bf16.msra.mxu0 %v1308_v27 }
 0x2e1   :  { %1311 = vmatprep.subr.bf16.mxu0 %v1310_v30 }
 0x2e4   :  { %1313 = vmatpush3.bf16.msra.mxu0 %v1312_v35 }
 0x399   :  { %v765_v36 = vpop.f32.mrb[10].mxu0  ;;  %v848_v38 = vpop.f32.mrb[14].mxu1 }
 0x39a   :  { %v859_v39 = vmul.f32 %v765_v36, %v1550_v14  ;;  %v863_v41 = vmul.f32 %v848_v38, %v1558_v33  ;;  %v767_v42 = vpop.f32.mrb[11].mxu0  ;;  %v850_v43 = vpop.f32.mrb[15].mxu1 }
 0x39b   :  { %v860_v44 = vmul.f32 %v767_v42, %v1552_v18  ;;  %v864_v45 = vmul.f32 %v850_v43, %v1560_v34 }
 0x39c   :  { %v867_v46 = vadd.f32 %v863_v41, %v859_v39 }
 0x39d   :  { %v868_v47 = vadd.f32 %v864_v45, %v860_v44  ;;  %v771_v48 = vpop.f32.mrb[12].mxu0  ;;  %v854_v49 = vpop.f32.mrb[16].mxu1 }
 0x39e   :  { %v861_v50 = vmul.f32 %v771_v48, %v1554_v23  ;;  %v865_v51 = vmul.f32 %v854_v49, %v1562_v37  ;;  %v773_v52 = vpop.f32.mrb[13].mxu0  ;;  %v856_v53 = vpop.f32.mrb[17].mxu1 }
 0x39f   :  { %v862_v14 = vmul.f32 %v773_v52, %v1556_v26  ;;  %v866_v33 = vmul.f32 %v856_v53, %v1564_v40  ;;  %974 = vmatprep.mubr.f32.mxu0 %v868_v47 }
 0x3a0   :  { %v869_v54 = vadd.f32 %v865_v51, %v861_v50  ;;  %975 = vmatmul.mubr.f32.vlgmr.msra.gmra.mrb[14].mxu0 %v867_v46 }
 0x3a1   :  { %v870_v18 = vadd.f32 %v866_v33, %v862_v14 }
 0x3a3   :  { %979 = vmatprep.mubr.f32.mxu0 %v870_v18 }
 0x3a4   :  { %980 = vmatmul.mubr.f32.gmra.mrb[16].mxu0 %v869_v54 }
 0x473   :  { %v1092_v34 = vpop.f32.mrb[14].mxu0 }
 0x474   :  { %v1093_v23 = vpop.f32.mrb[15].mxu0 }
 0x475   :  { %v1094_v56 = vadd.f32 %v1093_v23, %v1092_v34 }
 0x477   :  { %v977_v37 = vadd.f32 %v1094_v56, %v1015_v55  ;;  %v1095_v57 = vpop.f32.mrb[16].mxu0 }
 0x478   :  { %v1096_v58 = vpop.f32.mrb[17].mxu0 }
 0x479   :  { %985 = vst.msk [vmem:[%s1690_s9] sm:$0xff] %vm161_vm2, %v977_v37  ;;  %v1097_v26 = vadd.f32 %v1096_v58, %v1095_v57 }
 0x47b   :  { %v982_v40 = vadd.f32 %v1097_v26, %v1015_v55 }
 0x47d   :  { %986 = vst.msk [vmem:[%s1690_s9 + $0x8] sm:$0xff] %vm161_vm2, %v982_v40 }

// kernel: encoder_forward.5
= control target key start
LH: loop header
LB: loop body
LE: loop exit
PB: predicated region body
PF: predicated region fallthrough
CT: control target
= control target key end

     0   :  { %s1305_s0 = inlined_call_operand.vmem [shape: bf16[16,16], index: 0, kind: input, shape index: {}]   ;;  %s1306_s1 = inlined_call_operand.vmem [shape: bf16[16,64], index: 1, kind: input, shape index: {}, may-alias: {1,2}]   ;;  %s1307_s2 = inlined_call_operand.vmem [shape: bf16[16,64], index: 2, kind: input, shape index: {}, may-alias: {1,2}]   ;;  %s1308_s3 = inlined_call_operand.vmem [shape: bf16[64,128], index: 3, kind: input, shape index: {}]   ;;  %s1309_s4 = inlined_call_operand.vmem [shape: bf16[64,64], index: 4, kind: input, shape index: {}]   ;;  %s1310_s5 = inlined_call_operand.vmem [shape: f32[64,64], index: 5, kind: input, shape index: {}]   ;;  %s1311_s6 = inlined_call_operand.vmem [shape: f32[64,64], index: 6, kind: input, shape index: {}]   ;;  %s1312_s7 = inlined_call_operand.vmem [shape: f32[64,4], index: 7, kind: input, shape index: {}]   ;;  %s1313_s8 = inlined_call_operand.vmem [shape: f32[64,4], index: 8, kind: input, shape index: {}]   ;;  %s1314_s9 = inlined_call_operand.<no memory space> [shape: f32[1,1], index: 9, kind: input, shape index: {}]   ;;  %s1315_s10 = inlined_call_operand.hbm [shape: f32[16,128], index: 10, kind: output, shape index: {0}]   ;;  %s1316_s11 = inlined_call_operand.vmem [shape: f32[16,4], index: 11, kind: output, shape index: {1}]  }
   0x1   :  { %v17_v0 = vstv %s1314_s9 }
   0x2   :  { %18 = vst [vmem:[#allocation2] sm:$0x1] %v17_v0 }
   0x3   :  { %v1000_v1 = vld [vmem:[%s1308_s3] sm:$0xff]   ;;  %v1051_v2 = vmov 0.0   ;;  %v1001_v3 = vld [vmem:[%s1308_s3 + $0x8] sm:$0xff]   ;;  %vm1052_vm0 = vmmov 0   ;;  %v1002_v4 = vld [vmem:[%s1308_s3 + $0x10] sm:$0xff]  }
   0x4   :  { %813 = vmatprep.subr.bf16.mxu0 %v1051_v2  ;;  %831 = vmatprep.subr.bf16.mxu1 %v1051_v2  ;;  %v1006_v5 = vld [vmem:[%s1306_s1] sm:$0xff]   ;;  %v1003_v6 = vld [vmem:[%s1308_s3 + $0x18] sm:$0xff]  }
   0x5   :  { %814 = vmatpush3.bf16.msra.mxu0 %v1000_v1  ;;  %821 = vmatprep.mubr.msk.bf16.mxu0 %vm1052_vm0, %v1051_v2  ;;  %v1005_v7 = vld [vmem:[%s1305_s0] sm:$0xff]  }
   0x6   :  { %815 = vmatprep.subr.bf16.mxu0 %v1051_v2  ;;  %833 = vmatprep.mubr.msk.bf16.mxu1 %vm1052_vm0, %v1051_v2 }
   0x7   :  { %832 = vmatpush3.bf16.msra.mxu1 %v1006_v5 }
   0x9   :  { %816 = vmatpush3.bf16.msra.mxu0 %v1001_v3 }
   0xa   :  { %817 = vmatprep.subr.bf16.mxu0 %v1051_v2 }
   0xd   :  { %818 = vmatpush3.bf16.msra.mxu0 %v1002_v4 }
   0xe   :  { %19 = vsyncpa [#allocation4], 0  ;;  %819 = vmatprep.subr.bf16.mxu0 %v1051_v2  ;;  %vm137_vm1 = vcmask 130048   ;;  %v1151_v8 = vld [vmem:[%s1307_s2] sm:$0xff]   ;;  %vm85_vm2 = vcmask 523264   ;;  %v1054_v10 = vmov 0  }
   0xf   :  { %834 = vmatmul.mubr.msk.bf16.vlgmr.msra.gmra.mrb[0].mxu1 %vm137_vm1, %v1005_v7  ;;  %v1053_v9 = vmov 1065369472   ;;  %998 = vset.pattern.permute.xlu0 %v1054_v10  ;;  %v247_v11 = vld [vmem:[%s1310_s5] sm:$0xff]  ;;  %v248_v12 = vld [vmem:[%s1310_s5 + $0x8] sm:$0xff]  ;;  %v249_v13 = vld [vmem:[%s1310_s5 + $0x10] sm:$0xff] }
  0x10   :  { %999 = vset.pattern.permute.xlu1 %v1054_v10  ;;  %v925_v14 = vpack.c.bf16 %v248_v12, %v247_v11  ;;  %v250_v15 = vld [vmem:[%s1310_s5 + $0x18] sm:$0xff]  ;;  %v251_v29 = vld [vmem:[%s1310_s5 + $0x20] sm:$0xff]  ;;  %v252_v30 = vld [vmem:[%s1310_s5 + $0x28] sm:$0xff] }
  0x11   :  { %820 = vmatpush3.bf16.msra.mxu0 %v1003_v6  ;;  %v929_v16 = vpack.c.bf16 %v250_v15, %v249_v13  ;;  %v933_v31 = vpack.c.bf16 %v252_v30, %v251_v29  ;;  %v253_v35 = vld [vmem:[%s1310_s5 + $0x30] sm:$0xff]  ;;  %v254_v36 = vld [vmem:[%s1310_s5 + $0x38] sm:$0xff]  ;;  %v1007_v44 = vld [vmem:[%s1309_s4] sm:$0xff]   ;;  %s1055_s5 = smov [#allocation3]  }
  0x12   :  { %825 = vmatprep.subr.bf16.mxu0 %v1051_v2  ;;  %926 = vmatprep.subr.bf16.mxu1 %v925_v14  ;;  %v937_v37 = vpack.c.bf16 %v254_v36, %v253_v35  ;;  %v1008_v46 = vld [vmem:[%s1309_s4 + $0x8] sm:$0xff]   ;;  %v1009_v47 = vld [vmem:[%s1309_s4 + $0x10] sm:$0xff]   ;;  %v1010_v48 = vld [vmem:[%s1309_s4 + $0x18] sm:$0xff]   ;;  %s718_s26 = sshll.u32 %s1055_s5, 4  ;;  %s719_s26 = int_to_ptr.vmem [resolvable:$true] %s718_s26 }
  0x13   :  { %928 = vmatpush3.bf16.msra.mxu1 %v925_v14  ;;  %v427_v49 = vld [vmem:[%s1311_s6] sm:$0xff]  ;;  %v428_v50 = vld [vmem:[%s1311_s6 + $0x8] sm:$0xff]  ;;  %v429_v51 = vld [vmem:[%s1311_s6 + $0x10] sm:$0xff]  ;;  %s1027_s27 = scalar_lea.vmem %s719_s26, 256  ;;  %p1032_p1 = scmp.lt.s32.totalorder %s719_s26, %s719_s26 }
  0x14   :  { %822 = vmatmul.mubr.msk.bf16.vlgmr.msra.gmra.mrb[0].mxu0 %vm85_vm2, %v1151_v8  ;;  %930 = vmatprep.subr.bf16.mxu1 %v929_v16  ;;  %v941_v52 = vpack.c.bf16 %v428_v50, %v427_v49  ;;  %v430_v53 = vld [vmem:[%s1311_s6 + $0x18] sm:$0xff]  ;;  %v431_v55 = vld [vmem:[%s1311_s6 + $0x20] sm:$0xff]  ;;  %v432_v56 = vld [vmem:[%s1311_s6 + $0x28] sm:$0xff]  ;;  %p1028_p0 = scmp.ne.s32.totalorder %s719_s26, %s1027_s27  ;;  %p1033_p2 = scmp.lt.s32.totalorder %s1027_s27, %s1027_s27 }
  0x15   :  { %826 = vmatpush3.bf16.msra.mxu0 %v1053_v9  ;;  %827 = vmatprep.mubr.msk.bf16.mxu0 %vm1052_vm0, %v1051_v2  ;;  %v945_v54 = vpack.c.bf16 %v430_v53, %v429_v51  ;;  %v949_v57 = vpack.c.bf16 %v432_v56, %v431_v55  ;;  %v433_v58 = vld [vmem:[%s1311_s6 + $0x30] sm:$0xff]  ;;  %v434_v59 = vld [vmem:[%s1311_s6 + $0x38] sm:$0xff]  ;;  %v528_v61 = vld [vmem:[%s1313_s8] sm:$0xff] }
  0x16   :  { %v953_v60 = vpack.c.bf16 %v434_v59, %v433_v58  ;;  %v529_v62 = vld [vmem:[%s1313_s8 + $0x8] sm:$0xff]  ;;  %v530_v63 = vld [vmem:[%s1313_s8 + $0x10] sm:$0xff]  ;;  %v531_v1 = vld [vmem:[%s1313_s8 + $0x18] sm:$0xff]  ;;  %p1034_p3 = por %p1033_p2, %p1032_p1 }
  0x17   :  { %932 = vmatpush3.bf16.msra.mxu1 %v929_v16  ;;  %v957_v0 = vpack.c.bf16 %v529_v62, %v528_v61  ;;  %v532_v3 = vld [vmem:[%s1313_s8 + $0x20] sm:$0xff]  ;;  %v533_v4 = vld [vmem:[%s1313_s8 + $0x28] sm:$0xff]  ;;  %v535_v29 = vld [vmem:[%s1313_s8 + $0x38] sm:$0xff] }
  0x18   :  { %934 = vmatprep.subr.bf16.mxu1 %v933_v31  ;;  %v965_v5 = vpack.c.bf16 %v533_v4, %v532_v3  ;;  %v522_v36 = vld [vmem:[%s1312_s7 + $0x10] sm:$0xff]  ;;  %p1035_p4 = pnand %p1034_p3, %p1028_p0 }
  0x19   :  { %958 = vmatprep.subr.bf16.mxu0 %v957_v0 }
  0x1b   :  { %936 = vmatpush3.bf16.msra.mxu1 %v933_v31  ;;  %v520_v31 = vld [vmem:[%s1312_s7] sm:$0xff] }
  0x1c   :  { %828 = vmatmul.mubr.msk.bf16.vlgmr.msra.gmra.mrb[4].mxu0 %vm137_vm1, %v1005_v7  ;;  %938 = vmatprep.subr.bf16.mxu1 %v937_v37 }
  0x1d   :  { %960 = vmatpush3.bf16.msra.mxu0 %v957_v0 }
  0x1f   :  { %940 = vmatpush3.bf16.msra.mxu1 %v937_v37  ;;  %v523_v37 = vld [vmem:[%s1312_s7 + $0x18] sm:$0xff] }
  0x20   :  { %856 = vmatprep.subr.bf16.mxu1 %v1051_v2 }
  0xe2   :  { %v226_v17 = vpop.f32.mrb[0].mxu1 }
  0xe3   :  { %v835_v18 = vpop.f32.mrb[1].mxu1 }
  0xe4   :  { %v229_v33 = vpop.f32.mrb[2].mxu1 }
  0xe5   :  { %v836_v34 = vpop.f32.mrb[3].mxu1 }
  0xe6   :  { %v758_v34 = vld [vmem:[#allocation2] ss:$0 sm:$0xff] }
  0xe7   :  { %v123_v19 = vpop.f32.mrb[0].mxu0  ;;  %705 = vperm.xlu1 %999, %v758_v34  }
  0xe8   :  { %130 = vst [vmem:[#allocation3] sm:$0xff] %v123_v19  ;;  %v823_v20 = vpop.f32.mrb[1].mxu0 }
  0xe9   :  { %v126_v21 = vpop.f32.mrb[2].mxu0 }
  0xea   :  { %131 = vst [vmem:[#allocation3 + $0x8] sm:$0xff] %v126_v21  ;;  %v824_v22 = vpop.f32.mrb[3].mxu0 }
  0xef   :  { %v175_v23 = vpop.f32.mrb[4].mxu0 }
  0xf0   :  { %v182_v24 = vmax.f32 %v175_v23, 1e-12  ;;  %v829_v25 = vpop.f32.mrb[5].mxu0 }
  0xf1   :  { %v178_v26 = vpop.f32.mrb[6].mxu0 }
  0xf2   :  { %1011 = vrcp.f32 %v182_v24  ;;  %v183_v27 = vmax.f32 %v178_v26, 1e-12  ;;  %v830_v28 = vpop.f32.mrb[7].mxu0 }
  0xf3   :  { %v534_v28 = vld [vmem:[%s1313_s8 + $0x30] sm:$0xff] }
  0xf4   :  { %1013 = vrcp.f32 %v183_v27  ;;  %v969_v30 = vpack.c.bf16 %v535_v29, %v534_v28 }
  0xfc   :  { %v1012_v32 = vpop.eup %1011 }
  0xfd   :  { %235 = vperm.xlu0 %998, %v1012_v32   ;;  %v521_v32 = vld [vmem:[%s1312_s7 + $0x8] sm:$0xff] }
  0xfe   :  { %v1014_v38 = vpop.eup %1013 }
 0x101   :  { %240 = vperm.xlu0 %998, %v1014_v38  }
 0x17c   :  { %v236_v39 = vpop.permute.xlu0 %235 }
 0x17d   :  { %v1183_v40 = vmul.f32 %v236_v39, %v226_v17 }
 0x17f   :  { %v245_v41 = vmul.f32 %v1183_v40, %v1183_v40 }
 0x180   :  { %v241_v42 = vpop.permute.xlu0 %240 }
 0x181   :  { %v244_v43 = vmul.f32 %v241_v42, %v229_v33  ;;  %853 = vmatprep.mubr.msk.f32.mxu1 %vm85_vm2, %v245_v41  ;;  %v973_v33 = vpack.c.bf16 %v521_v32, %v520_v31  ;;  %v977_v41 = vpack.c.bf16 %v523_v37, %v522_v36  ;;  %v524_v42 = vld [vmem:[%s1312_s7 + $0x20] sm:$0xff] }
 0x183   :  { %v246_v45 = vmul.f32 %v244_v43, %v244_v43 }
 0x185   :  { %854 = vmatmul.mubr.msk.f32.vlgmr.msra.gmra.mrb[4].mxu1 %vm85_vm2, %v246_v45  ;;  %v526_v45 = vld [vmem:[%s1312_s7 + $0x30] sm:$0xff] }
 0x186   :  { %857 = vmatpush3.bf16.msra.mxu1 %v1007_v44  ;;  %864 = vmatprep.mubr.msk.bf16.mxu1 %vm1052_vm0, %v1051_v2 }
 0x187   :  { %858 = vmatprep.subr.bf16.mxu1 %v1051_v2 }
 0x18a   :  { %859 = vmatpush3.bf16.msra.mxu1 %v1008_v46  ;;  %v527_v46 = vld [vmem:[%s1312_s7 + $0x38] sm:$0xff] }
 0x18b   :  { %860 = vmatprep.subr.bf16.mxu1 %v1051_v2 }
 0x18e   :  { %861 = vmatpush3.bf16.msra.mxu1 %v1009_v47  ;;  %v985_v47 = vpack.c.bf16 %v527_v46, %v526_v45 }
 0x18f   :  { %862 = vmatprep.subr.bf16.mxu1 %v1051_v2  ;;  %v961_v2 = vpack.c.bf16 %v531_v1, %v530_v63 }
 0x191   :  { %962 = vmatprep.subr.bf16.mxu0 %v961_v2 }
 0x192   :  { %863 = vmatpush3.bf16.msra.mxu1 %v1010_v48  ;;  %964 = vmatpush3.bf16.msra.mxu0 %v961_v2 }
 0x193   :  { %942 = vmatprep.subr.bf16.mxu1 %v941_v52  ;;  %966 = vmatprep.subr.bf16.mxu0 %v965_v5 }
 0x195   :  { %865 = vmatmul.mubr.msk.bf16.vlgmr.msra.gmra.mrb[8].mxu1 %vm85_vm2, %v1151_v8 }
 0x196   :  { %944 = vmatpush3.bf16.msra.mxu1 %v941_v52  ;;  %968 = vmatpush3.bf16.msra.mxu0 %v965_v5 }
 0x197   :  { %946 = vmatprep.subr.bf16.mxu1 %v945_v54  ;;  %970 = vmatprep.subr.bf16.mxu0 %v969_v30 }
 0x19a   :  { %948 = vmatpush3.bf16.msra.mxu1 %v945_v54  ;;  %972 = vmatpush3.bf16.msra.mxu0 %v969_v30 }
 0x19b   :  { %950 = vmatprep.subr.bf16.mxu1 %v949_v57  ;;  %974 = vmatprep.subr.bf16.mxu0 %v973_v33 }
 0x19e   :  { %952 = vmatpush3.bf16.msra.mxu1 %v949_v57 }
 0x19f   :  { %954 = vmatprep.subr.bf16.mxu1 %v953_v60 }
 0x1a2   :  { %956 = vmatpush3.bf16.msra.mxu1 %v953_v60 }
 0x258   :  { %v855_v6 = vpop.f32.mrb[4].mxu1 }
 0x259   :  { %v337_v7 = vmax.f32 %v855_v6, 1e-24  ;;  %v327_v8 = vpop.f32.mrb[5].mxu1 }
 0x25a   :  { %v336_v9 = vmax.f32 %v327_v8, 1e-24 }
 0x25b   :  { %1015 = vrsqrt.f32 %v337_v7 }
 0x25c   :  { %1017 = vrsqrt.f32 %v336_v9 }
 0x265   :  { %v1016_v10 = vpop.eup %1015 }
 0x266   :  { %v1018_v11 = vpop.eup %1017  ;;  %v341_v12 = vmul.f32 %v1016_v10, %v244_v43  ;;  %v525_v43 = vld [vmem:[%s1312_s7 + $0x28] sm:$0xff] }
 0x267   :  { %v340_v13 = vmul.f32 %v1018_v11, %v1183_v40  ;;  %v981_v44 = vpack.c.bf16 %v525_v43, %v524_v42 }
 0x268   :  { %v746_v14 = vmul.f32 -1.442695, %v341_v12  ;;  %v420_v15 = vpop.f32.mrb[8].mxu1 }
 0x269   :  { %v745_v16 = vmul.f32 -1.442695, %v340_v13  ;;  %v866_v17 = vpop.f32.mrb[9].mxu1 }
 0x26a   :  { %1019 = vpow2.f32 %v746_v14  ;;  %v423_v18 = vpop.f32.mrb[10].mxu1 }
 0x26b   :  { %1021 = vpow2.f32 %v745_v16  ;;  %v867_v19 = vpop.f32.mrb[11].mxu1 }
 0x274   :  { %v1020_v20 = vpop.eup %1019 }
 0x275   :  { %v1022_v21 = vpop.eup %1021  ;;  %v349_v22 = vadd.f32 1.0, %v1020_v20 }
 0x276   :  { %v348_v23 = vadd.f32 1.0, %v1022_v21 }
 0x277   :  { %1023 = vrcp.f32 %v349_v22 }
 0x278   :  { %1025 = vrcp.f32 %v348_v23 }
 0x281   :  { %v1024_v24 = vpop.eup %1023 }
 0x282   :  { %v1026_v25 = vpop.eup %1025  ;;  %v517_v26 = vmul.f32 %v1024_v24, %v423_v18 }
 0x283   :  { %v516_v27 = vmul.f32 %v1026_v25, %v420_v15  ;;  %884 = vmatprep.mubr.msk.f32.mxu1 %vm85_vm2, %v1026_v25 }
 0x284   :  { %885 = vmatmul.mubr.msk.f32.vlgmr.msra.gmra.mrb[6].mxu1 %vm85_vm2, %v1024_v24 }
 0x357   :  { %v886_v35 = vpop.f32.mrb[6].mxu1 }
 0x358   :  { %v519_v38 = vmul.f32 %v886_v35, %v423_v18  ;;  %v507_v39 = vpop.f32.mrb[7].mxu1 }
 0x359   :  { %v518_v40 = vmul.f32 %v507_v39, %v420_v15 }
 0x35b   :  { %903 = vmatprep.mubr.msk.f32.mxu0 %vm85_vm2, %v518_v40 }
 0x35c   :  { %904 = vmatmul.mubr.msk.f32.vlgmr.msra.gmra.mrb[8].mxu0 %vm85_vm2, %v519_v38 }
 0x35d   :  { %976 = vmatpush3.bf16.msra.mxu0 %v973_v33  ;;  %922 = vmatprep.mubr.msk.f32.mxu0 %vm85_vm2, %v516_v27 }
 0x35e   :  { %978 = vmatprep.subr.bf16.mxu0 %v977_v41 }
 0x361   :  { %980 = vmatpush3.bf16.msra.mxu0 %v977_v41 }
 0x362   :  { %982 = vmatprep.subr.bf16.mxu0 %v981_v44 }
 0x365   :  { %984 = vmatpush3.bf16.msra.mxu0 %v981_v44 }
 0x366   :  { %986 = vmatprep.subr.bf16.mxu0 %v985_v47 }
 0x369   :  { %988 = vmatpush3.bf16.msra.mxu0 %v985_v47 }
 0x36c   :  { %923 = vmatmul.mubr.msk.f32.vlgmr.msra.gmra.mrb[8].mxu0 %vm85_vm2, %v517_v26 }
 0x36d   :  { %1038 = shalt.err (!%p1035_p4)
}
 0x36e   :  { %s1039_s6 = scalar_lea.hbm %s1315_s10, 256 }
 0x36f   :  { %p1040_p5 = scmp.ne.s32.totalorder %s1315_s10, %s1039_s6  ;;  %p1043_p6 = scmp.lt.u32.totalorder %s1039_s6, %s1315_s10 }
 0x371   :  { %p1045_p7 = pnand %p1043_p6, %p1040_p5 }
 0x373   :  { %1048 = shalt.err (!%p1045_p7)
}
 0x374   :  { %s1056_s1 = smov 128   ;;  %s1057_s2 = smov 8   ;;  %v706_v48 = vpop.permute.xlu1 %705  ;;  %vm710_vm3 = vcmask 31744  }
 0x375   :  { %724 = dma.vmem_to_hbm [thread:$0]  %s719_s26, 256, %s1315_s10, [#allocation4], %s1056_s1, %s1056_s1, %s1057_s2  }
 0x43f   :  { %v924_v49 = vpop.f32.mrb[8].mxu0 }
 0x440   :  { %v709_v50 = vadd.f32 %v924_v49, %v706_v48  ;;  %v689_v51 = vpop.f32.mrb[9].mxu0 }
 0x441   :  { %v708_v52 = vadd.f32 %v706_v48, %v689_v51 }
 0x442   :  { %712 = vst.msk [vmem:[%s1316_s11 + $0x8] sm:$0xff] %vm710_vm3, %v709_v50 }
 0x443   :  { %711 = vst.msk [vmem:[%s1316_s11] sm:$0xff] %vm710_vm3, %v708_v52 }
 0x444   :  { %1049 = dma.done.wait [#allocation4], 256  }
 0x445   :  { %1050 = vsyncadd [#allocation4], 4294967040 }
 0x446   :  { %732 = vsyncpa [#allocation4], 1 }

</bundles_post_ra>
